<compile_context>
chip_gen: v7x
topology: tpu7x:2x2x1
jax: 0.10.0
libtpu: 0.0.40
codegen_flags: <defaults>
</compile_context>

<pallas_src>
import jax
import jax.numpy as jnp
from jax.experimental import pallas as pl
from jax.experimental.pallas import tpu as pltpu

TWO_PI_ISH = 2.0 * 3.14  # the PyTorch module intentionally uses 3.14, not pi
HIDDEN = 512


def dqn_kernel(xT_ref, proj_ref, phase_ref, w1T_ref, b1_ref,
               w2T_ref, b2_ref, w3T_ref, b3_ref, o_ref):
    # xT_ref:   (2, TM)          f32   transposed input tile (lanes = batch)
    # proj_ref: (8, 2)           f32   2*3.14 * [B; B]
    # phase_ref:(8, 1)           f32   [0,0,0,0, -pi/2 x4]  (sin(x) = cos(x - pi/2))
    # w1T_ref:  (512, 8)         bf16  w1^T (resident)
    # b1/b2:    (512, 1)         f32
    # w2T_ref:  (512, 512)       bf16  w2^T (resident)
    # w3T_ref:  (OUT_ROWS, 512)  bf16  w3^T, rows zero-padded to 8 (resident)
    # b3_ref:   (OUT_ROWS, 1)    f32
    # o_ref:    (OUT_ROWS, TM)   f32
    xT = xT_ref[...]

    # Dense Fourier angles over (8, TM): rows 0:3 -> cos half, rows 4:7 -> sin half.
    ang = (proj_ref[:, 0:1] * xT[0:1, :]
           + proj_ref[:, 1:2] * xT[1:2, :]
           + phase_ref[...])
    xhat_T = jnp.cos(ang).astype(jnp.bfloat16)          # (8, TM) == x_hat^T

    # fc1: single K=8 dot against the unsplit w1^T.
    h1 = jnp.dot(w1T_ref[...], xhat_T,
                 preferred_element_type=jnp.float32) + b1_ref[...]
    h1 = jnp.maximum(h1, 0.0).astype(jnp.bfloat16)      # (512, TM)

    # fc2 -> relu
    h2 = jnp.dot(w2T_ref[...], h1,
                 preferred_element_type=jnp.float32) + b2_ref[...]
    h2 = jnp.maximum(h2, 0.0).astype(jnp.bfloat16)      # (512, TM)

    # fc3 (no activation); 8-row, lane-dense transposed store.
    o_ref[...] = jnp.dot(w3T_ref[...], h2,
                         preferred_element_type=jnp.float32) + b3_ref[...]


def dqn_forward(x, B, w1, b1, w2, b2, w3, b3, *, tm=512):
    n, in_feat = x.shape
    assert in_feat == 2, "module implies 2 input features per sample (x.view(-1, 2, 1))"
    hidden = w1.shape[1]
    out_dim = w3.shape[1]

    # Tile selection: as fat as requested, multiple of 128, but capped so the grid keeps
    # >= 2 blocks whenever the batch allows it (lets v7x shard across both TensorCores).
    n_min = ((n + 127) // 128) * 128
    half = max(128, ((n_min // 2 + 127) // 128) * 128)
    tm_eff = max(128, min(tm, half))
    n_pad = ((n + tm_eff - 1) // tm_eff) * tm_eff
    grid = (n_pad // tm_eff,)

    out_rows = max(8, ((out_dim + 7) // 8) * 8)   # pad fc3 rows to one sublane tile only

    # Transposed, zero-padded input: (2, n_pad), lanes = batch.
    xT = jnp.pad(x.astype(jnp.float32), ((0, n_pad - n), (0, 0))).T

    # Fourier coefficients with the 2*3.14 scale folded in; phase turns the sin half
    # into cos(x - pi/2) so one cos covers both halves.
    proj = (TWO_PI_ISH * jnp.concatenate([B, B], axis=0)).astype(jnp.float32)       # (8, 2)
    phase = jnp.concatenate([jnp.zeros((4,), jnp.float32),
                             jnp.full((4,), -jnp.pi / 2, jnp.float32)]).reshape(8, 1)

    w1T = w1.T.astype(jnp.bfloat16)                                                  # (512, 8)
    w2T = w2.T.astype(jnp.bfloat16)                                                  # (512, 512)
    w3T = jnp.pad(w3.T, ((0, out_rows - out_dim), (0, 0))).astype(jnp.bfloat16)      # (8, 512)
    b1c = b1.reshape(hidden, 1).astype(jnp.float32)
    b2c = b2.reshape(hidden, 1).astype(jnp.float32)
    b3c = jnp.pad(b3, ((0, out_rows - out_dim),)).reshape(out_rows, 1).astype(jnp.float32)

    const = lambda i: (0, 0)

    flops = 2 * n_pad * hidden * (8 + hidden + out_rows)
    bytes_accessed = (xT.size * 4 + proj.size * 4 + phase.size * 4
                      + w1T.size * 2 + w2T.size * 2 + w3T.size * 2
                      + (2 * hidden + out_rows) * 4
                      + out_rows * n_pad * 4)
    cost = pl.CostEstimate(flops=flops, transcendentals=8 * n_pad,
                           bytes_accessed=bytes_accessed)

    out_T = pl.pallas_call(
        dqn_kernel,
        out_shape=jax.ShapeDtypeStruct((out_rows, n_pad), jnp.float32),
        grid_spec=pltpu.PrefetchScalarGridSpec(
            num_scalar_prefetch=0,
            grid=grid,
            in_specs=[
                pl.BlockSpec((2, tm_eff), lambda i: (0, i)),   # x^T tile (pipelined)
                pl.BlockSpec((8, 2), const),                   # 2*3.14 * [B; B]
                pl.BlockSpec((8, 1), const),                   # phase rows
                pl.BlockSpec((hidden, 8), const),              # w1^T (resident)
                pl.BlockSpec((hidden, 1), const),              # b1
                pl.BlockSpec((hidden, hidden), const),         # w2^T (resident)
                pl.BlockSpec((hidden, 1), const),              # b2
                pl.BlockSpec((out_rows, hidden), const),       # w3^T (padded rows, resident)
                pl.BlockSpec((out_rows, 1), const),            # b3
            ],
            out_specs=pl.BlockSpec((out_rows, tm_eff), lambda i: (0, i)),
        ),
        compiler_params=pltpu.CompilerParams(
            dimension_semantics=("parallel",),
            vmem_limit_bytes=32 * 1024 * 1024,
        ),
        cost_estimate=cost,
    )(xT, proj, phase, w1T, b1c, w2T, b2c, w3T, b3c)

    return out_T[:out_dim, :n].T


def dqn_forward_ref(x, B, w1, b1, w2, b2, w3, b3):
    """Pure-JAX f32 reference mirroring the PyTorch forward exactly."""
    n = x.shape[0]
    xr = x.reshape(-1, 2, 1)                         # (N, 2, 1)
    feat = jnp.matmul(B, xr).reshape(n, 4)           # (4,2)@(N,2,1) -> (N,4)
    x_cos = jnp.cos(2 * 3.14 * feat)
    x_sin = jnp.sin(2 * 3.14 * feat)
    x_hat = jnp.concatenate([x_cos, x_sin], axis=1)  # (N, 8)
    h1 = jax.nn.relu(x_hat @ w1 + b1)
    h2 = jax.nn.relu(h1 @ w2 + b2)
    return h2 @ w3 + b3


if __name__ == "__main__":
    # Shapes implied by the module: input_size=2, fc1.in = 4*input_size = 8 after the
    # cos/sin concat, hidden=512 fixed by the module, output_size=4.
    batch = 200          # not a multiple of 128 -> exercises padding + a 2-step grid
    input_size = 2
    output_size = 4
    hidden = 512

    key = jax.random.PRNGKey(0)
    kx, kB, k1, k2, k3, kb1, kb2, kb3 = jax.random.split(key, 8)

    x = jax.random.normal(kx, (batch, input_size), dtype=jnp.float32)
    B = jax.random.normal(kB, (2 * input_size, input_size), dtype=jnp.float32)  # (4, 2)

    # Deterministic synthetic params; weights stored as (in, out).
    w1 = jax.random.normal(k1, (4 * input_size, hidden), dtype=jnp.float32) * 0.05
    b1 = jax.random.normal(kb1, (hidden,), dtype=jnp.float32) * 0.01
    w2 = jax.random.normal(k2, (hidden, hidden), dtype=jnp.float32) * 0.05
    b2 = jax.random.normal(kb2, (hidden,), dtype=jnp.float32) * 0.01
    w3 = jax.random.normal(k3, (hidden, output_size), dtype=jnp.float32) * 0.05
    b3 = jax.random.normal(kb3, (output_size,), dtype=jnp.float32) * 0.01

    # Small batch: tm=128, grid=2, row padding (200 -> 256).
    out = jax.block_until_ready(dqn_forward(x, B, w1, b1, w2, b2, w3, b3))
    ref = dqn_forward_ref(x, B, w1, b1, w2, b2, w3, b3)
    assert out.shape == (batch, output_size)
    max_err = float(jnp.max(jnp.abs(out - ref)))
    assert jnp.allclose(out, ref, atol=2e-2, rtol=2e-2), f"mismatch (max abs err {max_err})"

    # Larger batch: exercises the fat 512-row tile path (grid=2, tm=512, 1000 -> 1024).
    xb = jnp.tile(x, (5, 1))
    outb = jax.block_until_ready(dqn_forward(xb, B, w1, b1, w2, b2, w3, b3))
    refb = dqn_forward_ref(xb, B, w1, b1, w2, b2, w3, b3)
    assert outb.shape == (xb.shape[0], output_size)
    max_err_b = float(jnp.max(jnp.abs(outb - refb)))
    assert jnp.allclose(outb, refb, atol=2e-2, rtol=2e-2), f"mismatch (max abs err {max_err_b})"

    print("KERNEL_OK")
</pallas_src>

<mosaic_0001>
module attributes {stable_mosaic.version = 11 : i64} {
  func.func @dqn_kernel(%arg0: i32, %arg1: memref<2x128xf32, #tpu.memory_space<vmem>>, %arg2: memref<8x2xf32, #tpu.memory_space<vmem>>, %arg3: memref<8x1xf32, #tpu.memory_space<vmem>>, %arg4: memref<512x8xbf16, #tpu.memory_space<vmem>>, %arg5: memref<512x1xf32, #tpu.memory_space<vmem>>, %arg6: memref<512x512xbf16, #tpu.memory_space<vmem>>, %arg7: memref<512x1xf32, #tpu.memory_space<vmem>>, %arg8: memref<8x512xbf16, #tpu.memory_space<vmem>>, %arg9: memref<8x1xf32, #tpu.memory_space<vmem>>, %arg10: memref<8x128xf32, #tpu.memory_space<vmem>>) attributes {dimension_semantics = [#tpu.dimension_semantics<parallel>], iteration_bounds = array<i64: 2>, scalar_prefetch = 0 : i64, scratch_operands = 0 : i64, tpu.core_type = #tpu.core_type<tc>, window_params = [{transform_indices = @transform_0, window_bounds = array<i64: 2, 128>}, {pipeline_mode = #tpu.pipeline_mode<synchronous>, transform_indices = @transform_1, window_bounds = array<i64: 8, 2>}, {pipeline_mode = #tpu.pipeline_mode<synchronous>, transform_indices = @transform_2, window_bounds = array<i64: 8, 1>}, {pipeline_mode = #tpu.pipeline_mode<synchronous>, transform_indices = @transform_3, window_bounds = array<i64: 512, 8>}, {pipeline_mode = #tpu.pipeline_mode<synchronous>, transform_indices = @transform_4, window_bounds = array<i64: 512, 1>}, {pipeline_mode = #tpu.pipeline_mode<synchronous>, transform_indices = @transform_5, window_bounds = array<i64: 512, 512>}, {pipeline_mode = #tpu.pipeline_mode<synchronous>, transform_indices = @transform_6, window_bounds = array<i64: 512, 1>}, {pipeline_mode = #tpu.pipeline_mode<synchronous>, transform_indices = @transform_7, window_bounds = array<i64: 8, 512>}, {pipeline_mode = #tpu.pipeline_mode<synchronous>, transform_indices = @transform_8, window_bounds = array<i64: 8, 1>}, {transform_indices = @transform_9, window_bounds = array<i64: 8, 128>}]} {
    %c0 = arith.constant 0 : index
    %c0_0 = arith.constant 0 : index
    %0 = vector.load %arg1[%c0, %c0_0] : memref<2x128xf32, #tpu.memory_space<vmem>>, vector<2x128xf32>
    %c0_1 = arith.constant 0 : index
    %c0_2 = arith.constant 0 : index
    %1 = vector.load %arg2[%c0_1, %c0_2] : memref<8x2xf32, #tpu.memory_space<vmem>>, vector<8x1xf32>
    %2 = vector.extract_strided_slice %0 {offsets = [0, 0], sizes = [1, 128], strides = [1, 1]} : vector<2x128xf32> to vector<1x128xf32>
    %3 = vector.broadcast %1 : vector<8x1xf32> to vector<8x128xf32>
    %4 = vector.broadcast %2 : vector<1x128xf32> to vector<8x128xf32>
    %5 = arith.mulf %3, %4 : vector<8x128xf32>
    %c0_3 = arith.constant 0 : index
    %c1 = arith.constant 1 : index
    %6 = vector.load %arg2[%c0_3, %c1] : memref<8x2xf32, #tpu.memory_space<vmem>>, vector<8x1xf32>
    %7 = vector.extract_strided_slice %0 {offsets = [1, 0], sizes = [1, 128], strides = [1, 1]} : vector<2x128xf32> to vector<1x128xf32>
    %8 = vector.broadcast %6 : vector<8x1xf32> to vector<8x128xf32>
    %9 = vector.broadcast %7 : vector<1x128xf32> to vector<8x128xf32>
    %10 = arith.mulf %8, %9 : vector<8x128xf32>
    %11 = arith.addf %5, %10 : vector<8x128xf32>
    %c0_4 = arith.constant 0 : index
    %c0_5 = arith.constant 0 : index
    %12 = vector.load %arg3[%c0_4, %c0_5] : memref<8x1xf32, #tpu.memory_space<vmem>>, vector<8x1xf32>
    %13 = vector.broadcast %12 : vector<8x1xf32> to vector<8x128xf32>
    %14 = arith.addf %11, %13 : vector<8x128xf32>
    %15 = math.cos %14 : vector<8x128xf32>
    %16 = arith.truncf %15 : vector<8x128xf32> to vector<8x128xbf16>
    %c0_6 = arith.constant 0 : index
    %c0_7 = arith.constant 0 : index
    %17 = vector.load %arg4[%c0_6, %c0_7] : memref<512x8xbf16, #tpu.memory_space<vmem>>, vector<512x8xbf16>
    %cst = arith.constant dense<0.000000e+00> : vector<512x128xf32>
    %18 = tpu.matmul %17, %16, %cst {dimension_numbers = #tpu.dot_dimension_numbers<[1], [0], [0], [1], [0, 0, 1, 1], [], []>} : vector<512x8xbf16>, vector<8x128xbf16>, vector<512x128xf32> -> vector<512x128xf32>
    %c0_8 = arith.constant 0 : index
    %c0_9 = arith.constant 0 : index
    %19 = vector.load %arg5[%c0_8, %c0_9] : memref<512x1xf32, #tpu.memory_space<vmem>>, vector<512x1xf32>
    %20 = vector.broadcast %19 : vector<512x1xf32> to vector<512x128xf32>
    %21 = arith.addf %18, %20 : vector<512x128xf32>
    %cst_10 = arith.constant 0.000000e+00 : f32
    %22 = vector.broadcast %cst_10 : f32 to vector<512x128xf32>
    %23 = arith.maximumf %21, %22 : vector<512x128xf32>
    %24 = arith.truncf %23 : vector<512x128xf32> to vector<512x128xbf16>
    %c0_11 = arith.constant 0 : index
    %c0_12 = arith.constant 0 : index
    %25 = vector.load %arg6[%c0_11, %c0_12] : memref<512x512xbf16, #tpu.memory_space<vmem>>, vector<512x512xbf16>
    %cst_13 = arith.constant dense<0.000000e+00> : vector<512x128xf32>
    %26 = tpu.matmul %25, %24, %cst_13 {dimension_numbers = #tpu.dot_dimension_numbers<[1], [0], [0], [1], [0, 0, 1, 1], [], []>} : vector<512x512xbf16>, vector<512x128xbf16>, vector<512x128xf32> -> vector<512x128xf32>
    %c0_14 = arith.constant 0 : index
    %c0_15 = arith.constant 0 : index
    %27 = vector.load %arg7[%c0_14, %c0_15] : memref<512x1xf32, #tpu.memory_space<vmem>>, vector<512x1xf32>
    %28 = vector.broadcast %27 : vector<512x1xf32> to vector<512x128xf32>
    %29 = arith.addf %26, %28 : vector<512x128xf32>
    %cst_16 = arith.constant 0.000000e+00 : f32
    %30 = vector.broadcast %cst_16 : f32 to vector<512x128xf32>
    %31 = arith.maximumf %29, %30 : vector<512x128xf32>
    %32 = arith.truncf %31 : vector<512x128xf32> to vector<512x128xbf16>
    %c0_17 = arith.constant 0 : index
    %c0_18 = arith.constant 0 : index
    %33 = vector.load %arg8[%c0_17, %c0_18] : memref<8x512xbf16, #tpu.memory_space<vmem>>, vector<8x512xbf16>
    %cst_19 = arith.constant dense<0.000000e+00> : vector<8x128xf32>
    %34 = tpu.matmul %33, %32, %cst_19 {dimension_numbers = #tpu.dot_dimension_numbers<[1], [0], [0], [1], [0, 0, 1, 1], [], []>} : vector<8x512xbf16>, vector<512x128xbf16>, vector<8x128xf32> -> vector<8x128xf32>
    %c0_20 = arith.constant 0 : index
    %c0_21 = arith.constant 0 : index
    %35 = vector.load %arg9[%c0_20, %c0_21] : memref<8x1xf32, #tpu.memory_space<vmem>>, vector<8x1xf32>
    %36 = vector.broadcast %35 : vector<8x1xf32> to vector<8x128xf32>
    %37 = arith.addf %34, %36 : vector<8x128xf32>
    %c0_22 = arith.constant 0 : index
    %c0_23 = arith.constant 0 : index
    %38 = vector.load %arg10[%c0_22, %c0_23] : memref<8x128xf32, #tpu.memory_space<vmem>>, vector<8x128xf32>
    tpu.vector_store %arg10[%c0_22, %c0_23], %37 {strides = array<i32>} : memref<8x128xf32, #tpu.memory_space<vmem>>, vector<8x128xf32>,
    return
  }
  func.func @transform_0(%arg0: i32) -> (i32, i32) {
    %c0_i32 = arith.constant 0 : i32
    %c0_i32_0 = arith.constant 0 : i32
    return %c0_i32, %arg0 : i32, i32
  }
  func.func @transform_1(%arg0: i32) -> (i32, i32) {
    %c0_i32 = arith.constant 0 : i32
    %c0_i32_0 = arith.constant 0 : i32
    %c0_i32_1 = arith.constant 0 : i32
    return %c0_i32, %c0_i32_0 : i32, i32
  }
  func.func @transform_2(%arg0: i32) -> (i32, i32) {
    %c0_i32 = arith.constant 0 : i32
    %c0_i32_0 = arith.constant 0 : i32
    %c0_i32_1 = arith.constant 0 : i32
    return %c0_i32, %c0_i32_0 : i32, i32
  }
  func.func @transform_3(%arg0: i32) -> (i32, i32) {
    %c0_i32 = arith.constant 0 : i32
    %c0_i32_0 = arith.constant 0 : i32
    %c0_i32_1 = arith.constant 0 : i32
    return %c0_i32, %c0_i32_0 : i32, i32
  }
  func.func @transform_4(%arg0: i32) -> (i32, i32) {
    %c0_i32 = arith.constant 0 : i32
    %c0_i32_0 = arith.constant 0 : i32
    %c0_i32_1 = arith.constant 0 : i32
    return %c0_i32, %c0_i32_0 : i32, i32
  }
  func.func @transform_5(%arg0: i32) -> (i32, i32) {
    %c0_i32 = arith.constant 0 : i32
    %c0_i32_0 = arith.constant 0 : i32
    %c0_i32_1 = arith.constant 0 : i32
    return %c0_i32, %c0_i32_0 : i32, i32
  }
  func.func @transform_6(%arg0: i32) -> (i32, i32) {
    %c0_i32 = arith.constant 0 : i32
    %c0_i32_0 = arith.constant 0 : i32
    %c0_i32_1 = arith.constant 0 : i32
    return %c0_i32, %c0_i32_0 : i32, i32
  }
  func.func @transform_7(%arg0: i32) -> (i32, i32) {
    %c0_i32 = arith.constant 0 : i32
    %c0_i32_0 = arith.constant 0 : i32
    %c0_i32_1 = arith.constant 0 : i32
    return %c0_i32, %c0_i32_0 : i32, i32
  }
  func.func @transform_8(%arg0: i32) -> (i32, i32) {
    %c0_i32 = arith.constant 0 : i32
    %c0_i32_0 = arith.constant 0 : i32
    %c0_i32_1 = arith.constant 0 : i32
    return %c0_i32, %c0_i32_0 : i32, i32
  }
  func.func @transform_9(%arg0: i32) -> (i32, i32) {
    %c0_i32 = arith.constant 0 : i32
    %c0_i32_0 = arith.constant 0 : i32
    return %c0_i32, %arg0 : i32, i32
  }
}

</mosaic_0001>

<bundles_post_ra>
// kernel: tpu_custom_call.1
= control target key start
LH: loop header
LB: loop body
LE: loop exit
PB: predicated region body
PF: predicated region fallthrough
CT: control target
= control target key end

     0   :  { %14 = vsyncpa [#allocation3], 0  ;;  %s6081_s0 = inlined_call_operand.vmem [shape: f32[2,256], index: 0, kind: input, shape index: {}]   ;;  %s6082_s1 = inlined_call_operand.vmem [shape: f32[8,2], index: 1, kind: input, shape index: {}]   ;;  %s6083_s2 = inlined_call_operand.vmem [shape: f32[8,1], index: 2, kind: input, shape index: {}]   ;;  %s6084_s3 = inlined_call_operand.vmem [shape: bf16[512,8], index: 3, kind: input, shape index: {}]   ;;  %s6085_s4 = inlined_call_operand.vmem [shape: f32[512,1], index: 4, kind: input, shape index: {}]   ;;  %s6086_s5 = inlined_call_operand.vmem [shape: bf16[512,512], index: 5, kind: input, shape index: {}]   ;;  %s6087_s6 = inlined_call_operand.vmem [shape: f32[512,1], index: 6, kind: input, shape index: {}]   ;;  %s6088_s7 = inlined_call_operand.vmem [shape: bf16[8,512], index: 7, kind: input, shape index: {}]   ;;  %s6089_s8 = inlined_call_operand.vmem [shape: f32[8,1], index: 8, kind: input, shape index: {}]   ;;  %s6090_s9 = inlined_call_operand.hbm [shape: f32[8,256], index: 9, kind: output, shape index: {}]  }
   0x1   :  { %16 = vsyncpa [#allocation3 + $0x1], 0  ;;  %s4496_s30 = smov 0   ;;  %s4498_s10 = smov 0  }
   0x2   :  { %s4500_s11 = smov 0   ;;  %s4502_s12 = smov 0  }
   0x3 LB: > { %s4517_s13 = sadd.s32 4294967295, %s4435_s12   ;;  %s3558_s14 = sadd.s32 4294967294, %s4435_s12   ;;  %s4435_s12 = sphi %s4502_s12, %s6098_s12   ;;  %s4431_s11 = sphi %s4500_s11, %s6097_s11   ;;  %s4427_s10 = sphi %s4498_s10, %s6096_s10   ;;  %s4423_s30 = sphi %s4496_s30, %s6095_s30  }
   0x4   : > { %s4521_s15 = sadd.s32 1, %s4435_s12   ;;  %s223_s16 = sadd.s32 1, %s4431_s11 }
   0x5   : > { %s220_s17 = ssub.s32 %s4435_s12, %s4521_s15  ;;  %p233_p0 = scmp.ne.s32.totalorder %s4431_s11, %s4427_s10 }
   0x6   : > { %p221_p1 = scmp.eq.s32.totalorder %s220_s17, 0  ;;  %p234_p2 = scmp.eq.s32.totalorder %s4517_s13, 1 }
   0x7   : > { %p239_p3 = scmp.ne.s32.totalorder %s4427_s10, %s4423_s30  ;;  %p240_p4 = scmp.eq.s32.totalorder %s3558_s14, 1 }
   0x8   : > { %s4532_s18 = scalar_select %p221_p1, %s4431_s11, %s223_s16  }
   0x9   : > { %p4534_p5 = por %p234_p2, %p233_p0  ;;  %p4538_p6 = por %p240_p4, %p239_p3 }
   0xa   : > { %p3561_p7 = scmp.ge.s32.totalorder %s4435_s12, 1  ;;  %p289_p8 = scmp.lt.s32.totalorder %s4435_s12, 3 }
   0xc   : > { %p290_p9 = pnand %p3561_p7, %p289_p8 }
   0xd   : > { %v351_v0 = vld [vmem:[%s6083_s2] sm:$0xff] (!%p290_p9)  ;;  %v4437_v2 = vmov (!%p290_p9), 0   ;;  %v4438_v4 = vmov (!%p290_p9), 1   ;;  %v527_v5 = vld [vmem:[%s6085_s4 + $0x8] sm:$0xff] (!%p290_p9)  ;;  %v528_v6 = vld [vmem:[%s6085_s4 + $0x10] sm:$0xff] (!%p290_p9)  ;;  %vm1070_vm0 = vcmask (!%p290_p9), 64512   ;;  %v336_v63 = vlaneseq (!%p290_p9) }
   0xe   : > { %293 = sbr.rel (%p290_p9) target bundleno = 1282 (0x502), region = 56  ;;  %v330_v1 = vld [vmem:[%s6082_s1] sm:$0xff] (!%p290_p9)  ;;  %4139 = vset.pattern.permute.xlu1 (!%p290_p9), %v4437_v2  ;;  %4137 = vset.pattern.permute.xlu0 (!%p290_p9), %v4437_v2  ;;  %v529_v7 = vld [vmem:[%s6085_s4 + $0x18] sm:$0xff] (!%p290_p9)  ;;  %v531_v8 = vld [vmem:[%s6085_s4 + $0x28] sm:$0xff] (!%p290_p9)  ;;  %p324_p10 = scmp.lt.s32.totalorder (!%p290_p9), %s4517_s13, 1  ;;  %vm1167_vm14 = vcmask (!%p290_p9), 1043456  }
   0xf   : > { %354 = vperm.xlu1 (!%p290_p9), %4139, %v351_v0   ;;  %333 = vperm.xlu0 (!%p290_p9), %4137, %v330_v1   ;;  %v526_v3 = vld [vmem:[%s6085_s4] sm:$0xff] (!%p290_p9)  ;;  %v533_v10 = vld [vmem:[%s6085_s4 + $0x38] sm:$0xff] (!%p290_p9)  ;;  %v532_v11 = vld [vmem:[%s6085_s4 + $0x30] sm:$0xff] (!%p290_p9)  ;;  %s4445_s22 = smov (!%p290_p9), [#allocation2]  }
  0x10   : > { %2708 = vmatprep.subr.bf16.mxu1 (!%p290_p9), %v4437_v2  ;;  %v530_v9 = vld [vmem:[%s6085_s4 + $0x20] sm:$0xff] (!%p290_p9)  ;;  %v535_v13 = vld [vmem:[%s6085_s4 + $0x48] sm:$0xff] (!%p290_p9)  ;;  %v537_v14 = vld [vmem:[%s6085_s4 + $0x58] sm:$0xff] (!%p290_p9)  ;;  %s4377_s23 = sshll.u32 (!%p290_p9), %s4445_s22, 4  ;;  %s4378_s23 = int_to_ptr.vmem [resolvable:$false] %s4377_s23 }
  0x11   : > { %v534_v12 = vld [vmem:[%s6085_s4 + $0x40] sm:$0xff] (!%p290_p9)  ;;  %v536_v15 = vld [vmem:[%s6085_s4 + $0x50] sm:$0xff] (!%p290_p9)  ;;  %v539_v17 = vld [vmem:[%s6085_s4 + $0x68] sm:$0xff] (!%p290_p9)  ;;  %s4379_s24 = scalar_lea.vmem (!%p290_p9), %s4378_s23, 256 }
  0x12   : > { %v538_v16 = vld [vmem:[%s6085_s4 + $0x60] sm:$0xff] (!%p290_p9)  ;;  %v540_v18 = vld [vmem:[%s6085_s4 + $0x70] sm:$0xff] (!%p290_p9)  ;;  %v541_v19 = vld [vmem:[%s6085_s4 + $0x78] sm:$0xff] (!%p290_p9) }
  0x13   : > { %592 = vperm.xlu1 (!%p290_p9), %4139, %v526_v3   ;;  %4138 = vset.pattern.permute.xlu0 (!%p290_p9), %v4438_v4  ;;  %v542_v20 = vld [vmem:[%s6085_s4 + $0x80] sm:$0xff] (!%p290_p9)  ;;  %v543_v21 = vld [vmem:[%s6085_s4 + $0x88] sm:$0xff] (!%p290_p9)  ;;  %v544_v22 = vld [vmem:[%s6085_s4 + $0x90] sm:$0xff] (!%p290_p9)  ;;  %v337_v3 = vshrl.u32 (!%p290_p9), %v336_v63, 7 }
  0x14   : > { %342 = vperm.xlu0 (!%p290_p9), %4138, %v330_v1   ;;  %v545_v23 = vld [vmem:[%s6085_s4 + $0x98] sm:$0xff] (!%p290_p9)  ;;  %v546_v24 = vld [vmem:[%s6085_s4 + $0xa0] sm:$0xff] (!%p290_p9)  ;;  %v547_v25 = vld [vmem:[%s6085_s4 + $0xa8] sm:$0xff] (!%p290_p9) }
  0x15   : > { %v548_v26 = vld [vmem:[%s6085_s4 + $0xb0] sm:$0xff]  ;;  %v549_v27 = vld [vmem:[%s6085_s4 + $0xb8] sm:$0xff]  ;;  %v550_v28 = vld [vmem:[%s6085_s4 + $0xc0] sm:$0xff]  ;;  %s325_s21 = scalar_select %p324_p10, %s4517_s13, 1 }
  0x16   : > { %v551_v29 = vld [vmem:[%s6085_s4 + $0xc8] sm:$0xff]  ;;  %v552_v30 = vld [vmem:[%s6085_s4 + $0xd0] sm:$0xff]  ;;  %v553_v31 = vld [vmem:[%s6085_s4 + $0xd8] sm:$0xff] }
  0x17   : > { %597 = vperm.xlu1 %4139, %v527_v5   ;;  %v554_v32 = vld [vmem:[%s6085_s4 + $0xe0] sm:$0xff]  ;;  %v555_v33 = vld [vmem:[%s6085_s4 + $0xe8] sm:$0xff]  ;;  %v556_v34 = vld [vmem:[%s6085_s4 + $0xf0] sm:$0xff]  ;;  %s3563_s26 = sshll.u32 %s325_s21, 1  ;;  %v338_v5 = vsub.s32 0, %v337_v3  ;;  %s321_s21 = sand.u32 1, %s4427_s10  }
  0x18   : > { %4140 = vset.pattern.permute.xlu0 %v4437_v2  ;;  %v557_v35 = vld [vmem:[%s6085_s4 + $0xf8] sm:$0xff]  ;;  %v558_v36 = vld [vmem:[%s6085_s4 + $0x100] sm:$0xff]  ;;  %v559_v37 = vld [vmem:[%s6085_s4 + $0x108] sm:$0xff]  ;;  %s327_s16 = scalar_lea.vmem %s6081_s0, %s3563_s26  ;;  %s3562_s25 = sshll.u32 %s321_s21, 3 }
  0x19   : > { %602 = vperm.xlu0 %4140, %v528_v6   ;;  %v560_v38 = vld [vmem:[%s6085_s4 + $0x110] sm:$0xff]  ;;  %v561_v39 = vld [vmem:[%s6085_s4 + $0x118] sm:$0xff]  ;;  %v562_v40 = vld [vmem:[%s6085_s4 + $0x120] sm:$0xff]  ;;  %s3765_s26 = sshll.u32 %s4517_s13, 7  ;;  %s323_s27 = scalar_lea.vmem [#allocation2], %s3562_s25 }
  0x1a   : > { %v563_v41 = vld [vmem:[%s6085_s4 + $0x128] sm:$0xff]  ;;  %v564_v42 = vld [vmem:[%s6085_s4 + $0x130] sm:$0xff]  ;;  %v565_v43 = vld [vmem:[%s6085_s4 + $0x138] sm:$0xff]  ;;  %s3499_s28 = sshll.u32 %s323_s27, 4  ;;  %s3486_s17 = scalar_lea.sflag [#allocation3], %s321_s21  ;;  %s6041_s28 = int_to_ptr.vmem [resolvable:$true] %s3499_s28 }
  0x1b   : > { %607 = vperm.xlu1 %4139, %v529_v7   ;;  %v566_v44 = vld [vmem:[%s6085_s4 + $0x140] sm:$0xff]  ;;  %v567_v45 = vld [vmem:[%s6085_s4 + $0x148] sm:$0xff]  ;;  %v568_v46 = vld [vmem:[%s6085_s4 + $0x150] sm:$0xff]  ;;  %v347_v7 = vsub.s32 1, %v337_v3  ;;  %s4373_s13 = scalar_lea.vmem %s6041_s28, 128  ;;  %p4380_p0 = scmp.lt.s32.totalorder %s6041_s28, %s4378_s23 }
  0x1c   : > { %v569_v47 = vld [vmem:[%s6085_s4 + $0x158] sm:$0xff]  ;;  %v570_v48 = vld [vmem:[%s6085_s4 + $0x160] sm:$0xff]  ;;  %v571_v49 = vld [vmem:[%s6085_s4 + $0x168] sm:$0xff]  ;;  %p4374_p11 = scmp.ne.s32.totalorder %s6041_s28, %s4373_s13  ;;  %p4381_p1 = scmp.lt.s32.totalorder %s4379_s24, %s4373_s13 }
  0x1d   : > { %617 = vperm.xlu0 %4140, %v531_v8   ;;  %v573_v50 = vld [vmem:[%s6085_s4 + $0x178] sm:$0xff]  ;;  %v4141_v51 = vld [vmem:[%s6084_s3] sm:$0xff]   ;;  %v572_v52 = vld [vmem:[%s6085_s4 + $0x170] sm:$0xff] }
  0x1e   : > { %3847 = vmatprep.mubr.msk.bf16.mxu0 %vm1070_vm0, %v4141_v51  ;;  %v575_v53 = vld [vmem:[%s6085_s4 + $0x188] sm:$0xff]  ;;  %v574_v54 = vld [vmem:[%s6085_s4 + $0x180] sm:$0xff]  ;;  %v577_v55 = vld [vmem:[%s6085_s4 + $0x198] sm:$0xff]  ;;  %p4375_p12 = pnand %p4374_p11, %p4534_p5  ;;  %p4382_p2 = por %p4381_p1, %p4380_p0 }
  0x1f   : > { %612 = vperm.xlu1 %4139, %v530_v9   ;;  %v576_v56 = vld [vmem:[%s6085_s4 + $0x190] sm:$0xff]  ;;  %v579_v57 = vld [vmem:[%s6085_s4 + $0x1a8] sm:$0xff]  ;;  %v578_v58 = vld [vmem:[%s6085_s4 + $0x1a0] sm:$0xff] }
  0x20   : > { %v581_v59 = vld [vmem:[%s6085_s4 + $0x1b8] sm:$0xff]  ;;  %v580_v60 = vld [vmem:[%s6085_s4 + $0x1b0] sm:$0xff]  ;;  %v583_v61 = vld [vmem:[%s6085_s4 + $0x1c8] sm:$0xff]  ;;  %p4376_p13 = pneg %p4375_p12 }
  0x21   : > { %627 = vperm.xlu0 %4140, %v533_v10   ;;  %v582_v62 = vld [vmem:[%s6085_s4 + $0x1c0] sm:$0xff]  ;;  %v585_v0 = vld [vmem:[%s6085_s4 + $0x1d8] sm:$0xff]  ;;  %v584_v1 = vld [vmem:[%s6085_s4 + $0x1d0] sm:$0xff] }
  0x22   : > { %v587_v4 = vld [vmem:[%s6085_s4 + $0x1e8] sm:$0xff]  ;;  %v586_v6 = vld [vmem:[%s6085_s4 + $0x1e0] sm:$0xff]  ;;  %v589_v10 = vld [vmem:[%s6085_s4 + $0x1f8] sm:$0xff]  ;;  %p4383_p3 = pnand %p4382_p2, %p4376_p13 }
  0x23   : > { %622 = vperm.xlu1 %4139, %v532_v11   ;;  %v329_v8 = vld [vmem:[%s327_s16] sm:$0x3]  ;;  %s6039_s16 = scalar_lea.hbm %s6090_s9, %s3765_s26 }
  0x24   : > { %v339_v11 = vrot.slane %v329_v8, %v338_v5 }
  0x25   : > { %637 = vperm.xlu0 %4140, %v535_v13   ;;  %v348_v13 = vrot.slane %v329_v8, %v347_v7 }
  0x27   : > { %632 = vperm.xlu1 %4139, %v534_v12   ;;  %v588_v12 = vld [vmem:[%s6085_s4 + $0x1f0] sm:$0xff] }
  0x29   : > { %647 = vperm.xlu0 %4140, %v537_v14   ;;  %v1701_v14 = vld [vmem:[%s6087_s6 + $0x88] sm:$0xff] }
  0x2b   : > { %642 = vperm.xlu1 %4139, %v536_v15  }
  0x2d   : > { %657 = vperm.xlu0 %4140, %v539_v17  }
  0x2f   : > { %652 = vperm.xlu1 %4139, %v538_v16  }
  0x31   : > { %667 = vperm.xlu0 %4140, %v541_v19  }
  0x33   : > { %662 = vperm.xlu1 %4139, %v540_v18   ;;  %v1700_v18 = vld [vmem:[%s6087_s6 + $0x80] sm:$0xff] }
  0x35   : > { %677 = vperm.xlu0 %4140, %v543_v21  }
  0x37   : > { %672 = vperm.xlu1 %4139, %v542_v20   ;;  %v1685_v20 = vld [vmem:[%s6087_s6 + $0x8] sm:$0xff] }
  0x39   : > { %687 = vperm.xlu0 %4140, %v545_v23   ;;  %v1684_v23 = vld [vmem:[%s6087_s6] sm:$0xff] }
  0x3b   : > { %682 = vperm.xlu1 %4139, %v544_v22  }
  0x3d   : > { %697 = vperm.xlu0 %4140, %v547_v25   ;;  %v1703_v25 = vld [vmem:[%s6087_s6 + $0x98] sm:$0xff] }
  0x3f   : > { %692 = vperm.xlu1 %4139, %v546_v24  }
  0x41   : > { %707 = vperm.xlu0 %4140, %v549_v27   ;;  %v1702_v27 = vld [vmem:[%s6087_s6 + $0x90] sm:$0xff] }
  0x43   : > { %702 = vperm.xlu1 %4139, %v548_v26  }
  0x45   : > { %717 = vperm.xlu0 %4140, %v551_v29   ;;  %v1687_v29 = vld [vmem:[%s6087_s6 + $0x18] sm:$0xff] }
  0x47   : > { %712 = vperm.xlu1 %4139, %v550_v28  }
  0x49   : > { %727 = vperm.xlu0 %4140, %v553_v31   ;;  %v1686_v31 = vld [vmem:[%s6087_s6 + $0x10] sm:$0xff] }
  0x4b   : > { %722 = vperm.xlu1 %4139, %v552_v30  }
  0x4d   : > { %737 = vperm.xlu0 %4140, %v555_v33  }
  0x4f   : > { %732 = vperm.xlu1 %4139, %v554_v32   ;;  %v1705_v32 = vld [vmem:[%s6087_s6 + $0xa8] sm:$0xff] }
  0x51   : > { %747 = vperm.xlu0 %4140, %v557_v35  }
  0x53   : > { %742 = vperm.xlu1 %4139, %v556_v34  }
  0x55   : > { %757 = vperm.xlu0 %4140, %v559_v37  }
  0x57   : > { %752 = vperm.xlu1 %4139, %v558_v36   ;;  %v1704_v36 = vld [vmem:[%s6087_s6 + $0xa0] sm:$0xff] }
  0x59   : > { %767 = vperm.xlu0 %4140, %v561_v39  }
  0x5b   : > { %762 = vperm.xlu1 %4139, %v560_v38   ;;  %v1689_v38 = vld [vmem:[%s6087_s6 + $0x28] sm:$0xff] }
  0x5d   : > { %777 = vperm.xlu0 %4140, %v563_v41   ;;  %v4439_v41 = vmov 683565275  }
  0x5f   : > { %772 = vperm.xlu1 %4139, %v562_v40  }
  0x61   : > { %787 = vperm.xlu0 %4140, %v565_v43   ;;  %v4440_v43 = vmov 2475754826  }
  0x63   : > { %782 = vperm.xlu1 %4139, %v564_v42  }
  0x65   : > { %797 = vperm.xlu0 %4140, %v567_v45   ;;  %v1688_v45 = vld [vmem:[%s6087_s6 + $0x20] sm:$0xff] }
  0x67   : > { %792 = vperm.xlu1 %4139, %v566_v44  }
  0x69   : > { %807 = vperm.xlu0 %4140, %v569_v47   ;;  %v4441_v47 = vmov 2131351028  }
  0x6b   : > { %802 = vperm.xlu1 %4139, %v568_v46  }
  0x6d   : > { %817 = vperm.xlu0 %4140, %v571_v49  }
  0x6f   : > { %812 = vperm.xlu1 %4139, %v570_v48  }
  0x71   : > { %827 = vperm.xlu0 %4140, %v573_v50   ;;  %v4442_v50 = vmov 2102212464  }
  0x73   : > { %822 = vperm.xlu1 %4139, %v572_v52  }
  0x75   : > { %837 = vperm.xlu0 %4140, %v575_v53   ;;  %v4443_v53 = vmov 920167782  }
  0x77   : > { %832 = vperm.xlu1 %4139, %v574_v54  }
  0x79   : > { %847 = vperm.xlu0 %4140, %v577_v55  }
  0x7b   : > { %842 = vperm.xlu1 %4139, %v576_v56   ;;  %v4444_v56 = vmov 1326507024  }
  0x7d   : > { %857 = vperm.xlu0 %4140, %v579_v57  }
  0x7f   : > { %852 = vperm.xlu1 %4139, %v578_v58   ;;  %v1707_v58 = vld [vmem:[%s6087_s6 + $0xb8] sm:$0xff] }
  0x81   : > { %867 = vperm.xlu0 %4140, %v581_v59  }
  0x83   : > { %862 = vperm.xlu1 %4139, %v580_v60  }
  0x85   : > { %877 = vperm.xlu0 %4140, %v583_v61  }
  0x87   : > { %872 = vperm.xlu1 %4139, %v582_v62  }
  0x89   : > { %887 = vperm.xlu0 %4140, %v585_v0  }
  0x8b   : > { %882 = vperm.xlu1 %4139, %v584_v1   ;;  %v1706_v1 = vld [vmem:[%s6087_s6 + $0xb0] sm:$0xff] }
  0x8d   : > { %897 = vperm.xlu0 %4140, %v587_v4  }
  0x8e   : > { %v334_v9 = vpop.permute.xlu0 %333  ;;  %v355_v21 = vpop.permute.xlu1 %354 }
  0x8f   : > { %892 = vperm.xlu1 %4139, %v586_v6   ;;  %v340_v16 = vmul.f32 %v339_v11, %v334_v9  ;;  %v1691_v9 = vld [vmem:[%s6087_s6 + $0x38] sm:$0xff] }
  0x91   : > { %907 = vperm.xlu0 %4140, %v589_v10  }
  0x93   : > { %902 = vperm.xlu1 %4139, %v588_v12   ;;  %v343_v15 = vpop.permute.xlu0 %342 }
  0x94   : > { %v349_v17 = vmul.f32 %v348_v13, %v343_v15 }
  0x95   : > { %1835 = vperm.xlu0 %4140, %v1701_v14  }
  0x96   : > { %v350_v19 = vadd.f32 %v349_v17, %v340_v16  ;;  %v1690_v17 = vld [vmem:[%s6087_s6 + $0x30] sm:$0xff] }
  0x97   : > { %1830 = vperm.xlu1 %4139, %v1700_v18  }
  0x98   : > { %v4764_v22 = vadd.f32 %v355_v21, %v350_v19 }
  0x99   : > { %1755 = vperm.xlu0 %4140, %v1685_v20  }
  0x9a   : > { %v361_v24 = vand.u32 2139095040, %v4764_v22  ;;  %v358_v33 = vand.u32 2147483647, %v4764_v22  ;;  %vm360_vm8 = vcmp.lt.s32.totalorder %v4764_v22, 0  ;;  %vm450_vm13 = vweird.f32 %v4764_v22 }
  0x9b   : > { %1750 = vperm.xlu1 %4139, %v1684_v23  }
  0x9c   : > { %v362_v26 = vshrl.u32 %v361_v24, 23  ;;  %v365_v39 = vand.u32 8388607, %v358_v33  ;;  %v1709_v24 = vld [vmem:[%s6087_s6 + $0xc8] sm:$0xff]  ;;  %vm4908_vm9 = vcmp.le.f32.partialorder %v358_v33, 0.7853982 }
  0x9d   : > { %1845 = vperm.xlu0 %4140, %v1703_v25   ;;  %v1708_v25 = vld [vmem:[%s6087_s6 + $0xc0] sm:$0xff]  ;;  %v1718_v33 = vld [vmem:[%s6087_s6 + $0x110] sm:$0xff] }
  0x9e   : > { %v3564_v28 = vadd.s32 4294967169, %v362_v26  ;;  %v366_v59 = vor.u32 8388608, %v365_v39 }
  0x9f   : > { %1840 = vperm.xlu1 %4139, %v1702_v27  }
  0xa0   : > { %v368_v30 = vadd.s32 1, %v3564_v28  ;;  %v406_v12 = vshll.u32 %v366_v59, 8 }
  0xa1   : > { %1765 = vperm.xlu0 %4140, %v1687_v29   ;;  %v1693_v29 = vld [vmem:[%s6087_s6 + $0x48] sm:$0xff] }
  0xa2   : > { %vm369_vm1 = vcmp.gt.s32.totalorder %v368_v30, 0 }
  0xa3   : > { %v370_v34 = vsel %vm369_vm1, %v368_v30, 0  ;;  %1760 = vperm.xlu1 %4139, %v1686_v31   ;;  %v4830_v30 = vpop.permute.xlu1 %592 }
  0xa4   : > { %v372_v35 = vand.u32 31, %v370_v34  ;;  %v371_v40 = vshrl.u32 %v370_v34, 5 }
  0xa5   : > { %1855 = vperm.xlu0 %4140, %v1705_v32   ;;  %v1692_v32 = vld [vmem:[%s6087_s6 + $0x40] sm:$0xff] }
  0xa6   : > { %v373_v37 = vsub.s32 32, %v372_v35  ;;  %v375_v42 = vshll.u32 %v4439_v41, %v372_v35  ;;  %v378_v44 = vshll.u32 %v4440_v43, %v372_v35  ;;  %v381_v49 = vshll.u32 %v4441_v47, %v372_v35 }
  0xa7   : > { %1850 = vperm.xlu1 %4139, %v1704_v36   ;;  %v384_v52 = vshll.u32 %v4442_v50, %v372_v35  ;;  %v387_v55 = vshll.u32 %v4443_v53, %v372_v35  ;;  %vm390_vm2 = vcmp.lt.s32.totalorder %v371_v40, 1  ;;  %vm393_vm3 = vcmp.lt.s32.totalorder %v371_v40, 4  ;;  %v1711_v35 = vld [vmem:[%s6087_s6 + $0xd8] sm:$0xff] }
  0xa8   : > { %v376_v46 = vshrl.u32 %v4440_v43, %v373_v37  ;;  %v379_v48 = vshrl.u32 %v4441_v47, %v373_v37  ;;  %v382_v51 = vshrl.u32 %v4442_v50, %v373_v37  ;;  %v385_v54 = vshrl.u32 %v4443_v53, %v373_v37  ;;  %v1697_v50 = vld [vmem:[%s6087_s6 + $0x68] sm:$0xff] }
  0xa9   : > { %1775 = vperm.xlu0 %4140, %v1689_v38   ;;  %v388_v57 = vshrl.u32 %v4444_v56, %v373_v37  ;;  %v374_v6 = vshrl.u32 %v4439_v41, %v373_v37  ;;  %vm392_vm4 = vcmp.lt.s32.totalorder %v371_v40, 3  ;;  %vm391_vm5 = vcmp.lt.s32.totalorder %v371_v40, 2  ;;  %v1710_v37 = vld [vmem:[%s6087_s6 + $0xd0] sm:$0xff]  ;;  %v4843_v38 = vpop.permute.xlu1 %597  ;;  %v1695_v40 = vld [vmem:[%s6087_s6 + $0x58] sm:$0xff] }
  0xaa   : > { %v377_v60 = vor.u32 %v376_v46, %v375_v42  ;;  %v380_v61 = vor.u32 %v379_v48, %v378_v44  ;;  %v383_v62 = vor.u32 %v382_v51, %v381_v49  ;;  %v386_v63 = vor.u32 %v385_v54, %v384_v52  ;;  %v1694_v42 = vld [vmem:[%s6087_s6 + $0x50] sm:$0xff]  ;;  %v1713_v44 = vld [vmem:[%s6087_s6 + $0xe8] sm:$0xff]  ;;  %v4857_v46 = vpop.permute.xlu0 %602  ;;  %v1712_v48 = vld [vmem:[%s6087_s6 + $0xe0] sm:$0xff] }
  0xab   : > { %1770 = vperm.xlu1 %4139, %v1688_v45   ;;  %v389_v0 = vor.u32 %v388_v57, %v387_v55  ;;  %v1696_v52 = vld [vmem:[%s6087_s6 + $0x60] sm:$0xff]  ;;  %v1715_v56 = vld [vmem:[%s6087_s6 + $0xf8] sm:$0xff] }
  0xac   : > { %v395_v3 = vsel %vm393_vm3, %v383_v62, 2102212464  ;;  %v398_v4 = vsel %vm390_vm2, %v377_v60, %v380_v61  ;;  %v402_v5 = vsel %vm390_vm2, %v380_v61, %v383_v62  ;;  %v399_v7 = vsel %vm393_vm3, %v386_v63, 920167782 }
  0xad   : > { %1865 = vperm.xlu0 %4140, %v1707_v58   ;;  %v403_v8 = vsel %vm393_vm3, %v389_v0, 1326507024  ;;  %v400_v10 = vsel %vm392_vm4, %v383_v62, %v399_v7  ;;  %v394_v13 = vsel %vm390_vm2, %v374_v6, %v377_v60  ;;  %v396_v14 = vsel %vm392_vm4, %v380_v61, %v395_v3  ;;  %v4855_v45 = vpop.permute.xlu1 %607  ;;  %v1714_v60 = vld [vmem:[%s6087_s6 + $0xf0] sm:$0xff]  ;;  %v1699_v0 = vld [vmem:[%s6087_s6 + $0x78] sm:$0xff] }
  0xae   : > { %v404_v11 = vsel %vm392_vm4, %v386_v63, %v403_v8  ;;  %v401_v15 = vsel %vm391_vm5, %v398_v4, %v400_v10  ;;  %v397_v23 = vsel %vm391_vm5, %v394_v13, %v396_v14  ;;  %v4870_v54 = vpop.permute.xlu0 %617  ;;  %v1698_v6 = vld [vmem:[%s6087_s6 + $0x70] sm:$0xff]  ;;  %v1733_v8 = vld [vmem:[%s6087_s6 + $0x188] sm:$0xff] }
  0xaf   : > { %1860 = vperm.xlu1 %4139, %v1706_v1   ;;  %v405_v16 = vsel %vm391_vm5, %v402_v5, %v404_v11  ;;  %v4815_v20 = vmul.u32.u64.low %v406_v12, %v401_v15  ;;  %v4816_v21 = vmul.u32.u64.high %v406_v12, %v401_v15, %v4815_v20  ;;  %v413_v27 = vmul.u32 %v406_v12, %v397_v23  ;;  %v1732_v11 = vld [vmem:[%s6087_s6 + $0x180] sm:$0xff]  ;;  %v1717_v15 = vld [vmem:[%s6087_s6 + $0x108] sm:$0xff]  ;;  %v1719_v23 = vld [vmem:[%s6087_s6 + $0x118] sm:$0xff] }
  0xb0   : > { %v4812_v18 = vmul.u32.u64.low %v406_v12, %v405_v16  ;;  %v4813_v19 = vmul.u32.u64.high %v406_v12, %v405_v16, %v4812_v18 }
  0xb1   : > { %1785 = vperm.xlu0 %4140, %v1691_v9   ;;  %v416_v26 = vadd.s32 1, %v4816_v21  ;;  %v4868_v53 = vpop.permute.xlu1 %612 }
  0xb2   : > { %vm415_vm6 = vc.u32 %v4813_v19, %v4815_v20  ;;  %v414_v57 = vadd.s32 %v4815_v20, %v4813_v19  ;;  %v4884_v3 = vpop.permute.xlu0 %627 }
  0xb3   : > { %1780 = vperm.xlu1 %4139, %v1690_v17   ;;  %v417_v28 = vsel %vm415_vm6, %v416_v26, %v4816_v21  ;;  %v1716_v17 = vld [vmem:[%s6087_s6 + $0x100] sm:$0xff] }
  0xb4   : > { %v418_v31 = vadd.s32 %v417_v28, %v413_v27  ;;  %v1735_v27 = vld [vmem:[%s6087_s6 + $0x198] sm:$0xff]  ;;  %v1734_v28 = vld [vmem:[%s6087_s6 + $0x190] sm:$0xff] }
  0xb5   : > { %1875 = vperm.xlu0 %4140, %v1709_v24   ;;  %v4882_v1 = vpop.permute.xlu1 %622 }
  0xb6   : > { %v419_v34 = vadd.s32 536870912, %v418_v31  ;;  %v4897_v13 = vpop.permute.xlu0 %637 }
  0xb7   : > { %1870 = vperm.xlu1 %4139, %v1708_v25  }
  0xb8   : > { %v4838_v36 = vshrl.u32 %v419_v34, 30  ;;  %v1721_v34 = vld [vmem:[%s6087_s6 + $0x128] sm:$0xff] }
  0xb9   : > { %1795 = vperm.xlu0 %4140, %v1693_v29   ;;  %v4895_v12 = vpop.permute.xlu1 %632 }
  0xba   : > { %v421_v39 = vshll.u32 %v4838_v36, 30  ;;  %v444_v20 = vsub.s32 4, %v4838_v36  ;;  %v4921_v25 = vpop.permute.xlu0 %647 }
  0xbb   : > { %1790 = vperm.xlu1 %4139, %v1692_v32  }
  0xbc   : > { %v422_v41 = vsub.s32 %v418_v31, %v421_v39  ;;  %v445_v26 = vsel %vm360_vm8, %v444_v20, %v4838_v36  ;;  %v1720_v36 = vld [vmem:[%s6087_s6 + $0x120] sm:$0xff]  ;;  %v4147_v20 = vld [vmem:[%s6084_s3 + $0x30] sm:$0xff]  }
  0xbd   : > { %1885 = vperm.xlu0 %4140, %v1711_v35   ;;  %v4919_v24 = vpop.permute.xlu1 %642  ;;  %v447_v29 = vsel %vm4908_vm9, 0, %v445_v26 }
  0xbe   : > { %v424_v43 = vsub.s32 0, %v422_v41  ;;  %v4937_v32 = vpop.permute.xlu0 %657  ;;  %v451_v35 = vand.u32 3, %v447_v29  ;;  %v1745_v29 = vld [vmem:[%s6087_s6 + $0x1e8] sm:$0xff] }
  0xbf   : > { %1880 = vperm.xlu1 %4139, %v1710_v37  }
  0xc0   : > { %v3565_v47 = vmin.u32 %v424_v43, %v422_v41  ;;  %vm456_vm10 = vcmp.eq.s32.totalorder %v451_v35, 2  ;;  %vm453_vm11 = vcmp.eq.s32.totalorder %v451_v35, 0  ;;  %vm452_vm12 = vcmp.lt.s32.totalorder %v451_v35, 2  ;;  %v1744_v35 = vld [vmem:[%s6087_s6 + $0x1e0] sm:$0xff] }
  0xc1   : > { %1805 = vperm.xlu0 %4140, %v1695_v40   ;;  %v4935_v31 = vpop.permute.xlu1 %652 }
  0xc2   : > { %v426_v49 = vclz %v3565_v47  ;;  %v4950_v43 = vpop.permute.xlu0 %667  ;;  %v1736_v47 = vld [vmem:[%s6087_s6 + $0x1a0] sm:$0xff] }
  0xc3   : > { %1800 = vperm.xlu1 %4139, %v1694_v42  }
  0xc4   : > { %v3566_v51 = vadd.s32 4294967294, %v426_v49 }
  0xc5   : > { %1895 = vperm.xlu0 %4140, %v1713_v44   ;;  %v4948_v42 = vpop.permute.xlu1 %662 }
  0xc6   : > { %vm3567_vm7 = vcmp.lt.s32.totalorder %v3566_v51, 0 }
  0xc7   : > { %1890 = vperm.xlu1 %4139, %v1712_v48   ;;  %v429_v55 = vsel %vm3567_vm7, 0, %v3566_v51  ;;  %v1723_v51 = vld [vmem:[%s6087_s6 + $0x138] sm:$0xff] }
  0xc8   : > { %v430_v58 = vsub.s32 32, %v429_v55  ;;  %v434_v59 = vsub.s32 4294967266, %v429_v55  ;;  %v431_v61 = vshll.u32 %v422_v41, %v429_v55  ;;  %v1737_v41 = vld [vmem:[%s6087_s6 + $0x1a8] sm:$0xff] }
  0xc9   : > { %1815 = vperm.xlu0 %4140, %v1697_v50  }
  0xca   : > { %v432_v62 = vshrl.u32 %v414_v57, %v430_v58  ;;  %v435_v63 = vadd.s32 127, %v434_v59  ;;  %v4962_v57 = vpop.permute.xlu1 %672  ;;  %v4964_v58 = vpop.permute.xlu0 %677  ;;  %v4142_v59 = vld [vmem:[%s6084_s3 + $0x8] sm:$0xff]  }
  0xcb   : > { %1810 = vperm.xlu1 %4139, %v1696_v52  }
  0xcc   : > { %v433_v4 = vor.u32 %v432_v62, %v431_v61  ;;  %v436_v5 = vshll.u32 %v435_v63, 23  ;;  %v4143_v61 = vld [vmem:[%s6084_s3 + $0x10] sm:$0xff]   ;;  %v1725_v63 = vld [vmem:[%s6087_s6 + $0x148] sm:$0xff] }
  0xcd   : > { %1905 = vperm.xlu0 %4140, %v1715_v56   ;;  %v1722_v56 = vld [vmem:[%s6087_s6 + $0x130] sm:$0xff] }
  0xce   : > { %v437_v7 = vor.u32 4788187, %v436_v5  ;;  %v440_v10 = vcvt.s32.f32 %v433_v4  ;;  %v1738_v62 = vld [vmem:[%s6087_s6 + $0x1b0] sm:$0xff]  ;;  %v4985_v4 = vpop.permute.xlu0 %687  ;;  %v1724_v5 = vld [vmem:[%s6087_s6 + $0x140] sm:$0xff] }
  0xcf   : > { %1900 = vperm.xlu1 %4139, %v1714_v60   ;;  %v1739_v60 = vld [vmem:[%s6087_s6 + $0x1b8] sm:$0xff] }
  0xd0   : > { %v438_v9 = vand.u32 2147483647, %v437_v7  ;;  %v1741_v7 = vld [vmem:[%s6087_s6 + $0x1c8] sm:$0xff] }
  0xd1   : > { %1825 = vperm.xlu0 %4140, %v1699_v0   ;;  %v4983_v0 = vpop.permute.xlu1 %682 }
  0xd2   : > { %v441_v14 = vmul.f32 %v440_v10, %v438_v9  ;;  %v1740_v9 = vld [vmem:[%s6087_s6 + $0x1c0] sm:$0xff] }
  0xd3   : > { %1820 = vperm.xlu1 %4139, %v1698_v6   ;;  %v4144_v6 = vld [vmem:[%s6084_s3 + $0x18] sm:$0xff]  }
  0xd4   : > { %v442_v16 = vxor.u32 2147483648, %v441_v14 }
  0xd5   : > { %1995 = vperm.xlu0 %4140, %v1733_v8   ;;  %v4145_v8 = vld [vmem:[%s6084_s3 + $0x20] sm:$0xff]   ;;  %v5003_v10 = vpop.permute.xlu1 %692 }
  0xd6   : > { %v443_v19 = vsel %vm360_vm8, %v442_v16, %v441_v14  ;;  %v1727_v14 = vld [vmem:[%s6087_s6 + $0x158] sm:$0xff]  ;;  %v4146_v16 = vld [vmem:[%s6084_s3 + $0x28] sm:$0xff]  }
  0xd7   : > { %1990 = vperm.xlu1 %4139, %v1732_v11   ;;  %v446_v21 = vsel %vm4908_vm9, %v4764_v22, %v443_v19  ;;  %v5005_v11 = vpop.permute.xlu0 %697 }
  0xd8   : > { %4369 = vcosq.f32 %v446_v21 }
  0xd9   : > { %1915 = vperm.xlu0 %4140, %v1717_v15   ;;  %4371 = vsinq.f32 %v446_v21  ;;  %v1726_v15 = vld [vmem:[%s6087_s6 + $0x150] sm:$0xff]  ;;  %v5021_v18 = vpop.permute.xlu1 %702 }
  0xda   : > { %v1742_v21 = vld [vmem:[%s6087_s6 + $0x1d0] sm:$0xff] }
  0xdb   : > { %1910 = vperm.xlu1 %4139, %v1716_v17   ;;  %v1743_v17 = vld [vmem:[%s6087_s6 + $0x1d8] sm:$0xff]  ;;  %v5023_v19 = vpop.permute.xlu0 %707 }
  0xdd   : > { %1925 = vperm.xlu0 %4140, %v1719_v23   ;;  %v1729_v23 = vld [vmem:[%s6087_s6 + $0x168] sm:$0xff]  ;;  %v5039_v26 = vpop.permute.xlu1 %712 }
  0xdf   : > { %1920 = vperm.xlu1 %4139, %v1718_v33   ;;  %v1728_v33 = vld [vmem:[%s6087_s6 + $0x160] sm:$0xff] }
  0xe1   : > { %2005 = vperm.xlu0 %4140, %v1735_v27   ;;  %v5041_v27 = vpop.permute.xlu0 %717 }
  0xe2   : > { %v4370_v37 = vpop.eup %4369 }
  0xe3   : > { %2000 = vperm.xlu1 %4139, %v1734_v28   ;;  %v4372_v39 = vpop.eup %4371  ;;  %v457_v40 = vxor.u32 2147483648, %v4370_v37  ;;  %v4148_v28 = vld [vmem:[%s6084_s3 + $0x38] sm:$0xff]  }
  0xe4   : > { %v454_v44 = vxor.u32 2147483648, %v4372_v39 }
  0xe5   : > { %1935 = vperm.xlu0 %4140, %v1721_v34   ;;  %v458_v48 = vsel %vm456_vm10, %v457_v40, %v4372_v39  ;;  %v4149_v34 = vld [vmem:[%s6084_s3 + $0x40] sm:$0xff]   ;;  %v5061_v39 = vpop.permute.xlu0 %727  ;;  %v1730_v40 = vld [vmem:[%s6087_s6 + $0x170] sm:$0xff] }
  0xe6   : > { %v455_v49 = vsel %vm453_vm11, %v4370_v37, %v454_v44  ;;  %v5059_v37 = vpop.permute.xlu1 %722  ;;  %v1747_v44 = vld [vmem:[%s6087_s6 + $0x1f8] sm:$0xff] }
  0xe7   : > { %1930 = vperm.xlu1 %4139, %v1720_v36   ;;  %v459_v50 = vsel %vm452_vm12, %v455_v49, %v458_v48  ;;  %v1731_v36 = vld [vmem:[%s6087_s6 + $0x178] sm:$0xff]  ;;  %v1746_v48 = vld [vmem:[%s6087_s6 + $0x1f0] sm:$0xff] }
  0xe8   : > { %v460_v52 = vsel %vm450_vm13, nan, %v459_v50 }
  0xe9   : > { %2015 = vperm.xlu0 %4140, %v1737_v41   ;;  %v461_v55 = vpack.c.bf16 %v460_v52, %v460_v52  ;;  %v4150_v41 = vld [vmem:[%s6084_s3 + $0x48] sm:$0xff]   ;;  %v5081_v50 = vpop.permute.xlu0 %737  ;;  %v4152_v52 = vld [vmem:[%s6084_s3 + $0x58] sm:$0xff]  }
  0xea   : > { %v5079_v49 = vpop.permute.xlu1 %732 }
  0xeb   : > { %2010 = vperm.xlu1 %4139, %v1736_v47   ;;  %4085 = vmatprep.subr.msk.bf16.mxu0 %vm1167_vm14, %v461_v55  ;;  %v1169_v22 = vsel %vm1167_vm14, %v461_v55, 0  ;;  %v4151_v47 = vld [vmem:[%s6084_s3 + $0x50] sm:$0xff]  }
  0xec   : > { %3846 = vmatpush3.bf16.msra.mxu0 %v1169_v22  ;;  %v4154_v22 = vld [vmem:[%s6084_s3 + $0x68] sm:$0xff]  }
  0xed   : > { %1945 = vperm.xlu0 %4140, %v1723_v51   ;;  %2997 = vmatprep.subr.bf16.mxu0 %v4437_v2  ;;  %v3384_v51 = vld [vmem:[%s6089_s8] sm:$0xff] }
  0xee   : > { %v5091_v55 = vpop.permute.xlu1 %742 }
  0xef   : > { %1940 = vperm.xlu1 %4139, %v1722_v56   ;;  %3848 = vmatmul.mubr.msk.bf16.vlgmr.msra.gmra.mrb[0].mxu0 %vm1070_vm0, %v4142_v59  ;;  %v4153_v56 = vld [vmem:[%s6084_s3 + $0x60] sm:$0xff]   ;;  %v4155_v59 = vld [vmem:[%s6084_s3 + $0x70] sm:$0xff]  }
  0xf0   : > { %3851 = vmatprep.mubr.msk.bf16.mxu0 %vm1070_vm0, %v4143_v61  ;;  %v4157_v61 = vld [vmem:[%s6084_s3 + $0x80] sm:$0xff]  }
  0xf1   : > { %2025 = vperm.xlu0 %4140, %v1739_v60   ;;  %v4156_v60 = vld [vmem:[%s6084_s3 + $0x78] sm:$0xff]  }
  0xf3   : > { %2020 = vperm.xlu1 %4139, %v1738_v62   ;;  %v4158_v62 = vld [vmem:[%s6084_s3 + $0x88] sm:$0xff]  }
  0xf5   : > { %1955 = vperm.xlu0 %4140, %v1725_v63   ;;  %v4159_v63 = vld [vmem:[%s6084_s3 + $0x90] sm:$0xff]  }
  0xf7   : > { %1950 = vperm.xlu1 %4139, %v1724_v5   ;;  %3852 = vmatmul.mubr.msk.bf16.gmra.mrb[4].mxu0 %vm1070_vm0, %v4144_v6  ;;  %v4160_v5 = vld [vmem:[%s6084_s3 + $0x98] sm:$0xff]   ;;  %v4161_v6 = vld [vmem:[%s6084_s3 + $0xa0] sm:$0xff]  }
  0xf8   : > { %3855 = vmatprep.mubr.msk.bf16.mxu0 %vm1070_vm0, %v4145_v8  ;;  %v4163_v8 = vld [vmem:[%s6084_s3 + $0xb0] sm:$0xff]  }
  0xf9   : > { %2035 = vperm.xlu0 %4140, %v1741_v7   ;;  %v4162_v7 = vld [vmem:[%s6084_s3 + $0xa8] sm:$0xff]  }
  0xfb   : > { %2030 = vperm.xlu1 %4139, %v1740_v9   ;;  %v4164_v9 = vld [vmem:[%s6084_s3 + $0xb8] sm:$0xff]  }
  0xfd   : > { %1965 = vperm.xlu0 %4140, %v1727_v14   ;;  %v4165_v14 = vld [vmem:[%s6084_s3 + $0xc0] sm:$0xff]  }
  0xff   : > { %1960 = vperm.xlu1 %4139, %v1726_v15   ;;  %3856 = vmatmul.mubr.msk.bf16.gmra.mrb[8].mxu0 %vm1070_vm0, %v4146_v16  ;;  %v4166_v15 = vld [vmem:[%s6084_s3 + $0xc8] sm:$0xff]   ;;  %v4167_v16 = vld [vmem:[%s6084_s3 + $0xd0] sm:$0xff]  }
 0x100   : > { %3859 = vmatprep.mubr.msk.bf16.mxu0 %vm1070_vm0, %v4147_v20  ;;  %v4169_v20 = vld [vmem:[%s6084_s3 + $0xe0] sm:$0xff]  }
 0x101   : > { %2045 = vperm.xlu0 %4140, %v1743_v17   ;;  %v4168_v17 = vld [vmem:[%s6084_s3 + $0xd8] sm:$0xff]  }
 0x103   : > { %2040 = vperm.xlu1 %4139, %v1742_v21   ;;  %v4170_v21 = vld [vmem:[%s6084_s3 + $0xe8] sm:$0xff]  }
 0x105   : > { %1975 = vperm.xlu0 %4140, %v1729_v23   ;;  %v4171_v23 = vld [vmem:[%s6084_s3 + $0xf0] sm:$0xff]  }
 0x107   : > { %1970 = vperm.xlu1 %4139, %v1728_v33   ;;  %3860 = vmatmul.mubr.msk.bf16.gmra.mrb[12].mxu0 %vm1070_vm0, %v4148_v28  ;;  %v4172_v33 = vld [vmem:[%s6084_s3 + $0xf8] sm:$0xff]   ;;  %v4175_v28 = vld [vmem:[%s6086_s5 + $0x4] ss:$16 sps:$4 sm:$0xff]  }
 0x108   : > { %3863 = vmatprep.mubr.msk.bf16.mxu0 %vm1070_vm0, %v4149_v34  ;;  %2740 = vmatprep.mubr.bf16.mxu1 %v4175_v28 }
 0x109   : > { %2055 = vperm.xlu0 %4140, %v1745_v29  }
 0x10b   : > { %2050 = vperm.xlu1 %4139, %v1744_v35  }
 0x10d   : > { %1985 = vperm.xlu0 %4140, %v1731_v36  }
 0x10f   : > { %1980 = vperm.xlu1 %4139, %v1730_v40   ;;  %3864 = vmatmul.mubr.msk.bf16.gmra.mrb[16].mxu0 %vm1070_vm0, %v4150_v41 }
 0x110   : > { %3867 = vmatprep.mubr.msk.bf16.mxu0 %vm1070_vm0, %v4151_v47 }
 0x111   : > { %2065 = vperm.xlu0 %4140, %v1747_v44  }
 0x113   : > { %2060 = vperm.xlu1 %4139, %v1746_v48  }
 0x117   : > { %3387 = vperm.xlu1 %4139, %v3384_v51   ;;  %3868 = vmatmul.mubr.msk.bf16.gmra.mrb[20].mxu0 %vm1070_vm0, %v4152_v52 }
 0x118   : > { %3871 = vmatprep.mubr.msk.bf16.mxu0 %vm1070_vm0, %v4153_v56 }
 0x11f   : > { %3872 = vmatmul.mubr.msk.bf16.gmra.mrb[24].mxu0 %vm1070_vm0, %v4154_v22 }
 0x120   : > { %3875 = vmatprep.mubr.msk.bf16.mxu0 %vm1070_vm0, %v4155_v59  ;;  %v4201_v59 = vld [vmem:[%s6086_s5 + $0xc] ss:$16 sps:$4 sm:$0xff]  }
 0x127   : > { %3876 = vmatmul.mubr.msk.bf16.gmra.mrb[28].mxu0 %vm1070_vm0, %v4156_v60 }
 0x128   : > { %3879 = vmatprep.mubr.msk.bf16.mxu0 %vm1070_vm0, %v4157_v61 }
 0x12f   : > { %3880 = vmatmul.mubr.msk.bf16.gmra.mrb[32].mxu0 %vm1070_vm0, %v4158_v62 }
 0x130   : > { %3883 = vmatprep.mubr.msk.bf16.mxu0 %vm1070_vm0, %v4159_v63 }
 0x137   : > { %3884 = vmatmul.mubr.msk.bf16.gmra.mrb[36].mxu0 %vm1070_vm0, %v4160_v5 }
 0x138   : > { %3887 = vmatprep.mubr.msk.bf16.mxu0 %vm1070_vm0, %v4161_v6 }
 0x13f   : > { %3888 = vmatmul.mubr.msk.bf16.gmra.mrb[40].mxu0 %vm1070_vm0, %v4162_v7 }
 0x140   : > { %3891 = vmatprep.mubr.msk.bf16.mxu0 %vm1070_vm0, %v4163_v8 }
 0x147   : > { %3892 = vmatmul.mubr.msk.bf16.gmra.mrb[44].mxu0 %vm1070_vm0, %v4164_v9 }
 0x148   : > { %3895 = vmatprep.mubr.msk.bf16.mxu0 %vm1070_vm0, %v4165_v14 }
 0x14f   : > { %3896 = vmatmul.mubr.msk.bf16.gmra.mrb[48].mxu0 %vm1070_vm0, %v4166_v15 }
 0x150   : > { %3899 = vmatprep.mubr.msk.bf16.mxu0 %vm1070_vm0, %v4167_v16 }
 0x157   : > { %3900 = vmatmul.mubr.msk.bf16.gmra.mrb[52].mxu0 %vm1070_vm0, %v4168_v17 }
 0x158   : > { %3903 = vmatprep.mubr.msk.bf16.mxu0 %vm1070_vm0, %v4169_v20 }
 0x15f   : > { %3904 = vmatmul.mubr.msk.bf16.gmra.mrb[56].mxu0 %vm1070_vm0, %v4170_v21 }
 0x160   : > { %3907 = vmatprep.mubr.msk.bf16.mxu0 %vm1070_vm0, %v4171_v23 }
 0x167   : > { %3908 = vmatmul.mubr.msk.bf16.gmra.mrb[60].mxu0 %vm1070_vm0, %v4172_v33 }
 0x168   : > { %3029 = vmatprep.mubr.bf16.mxu0 %v4201_v59 }
 0x1c2   : > { %v3849_v29 = vpop.f32.mrb[0].mxu0 }
 0x1c3   : > { %v1214_v34 = vadd.f32 %v3849_v29, %v4857_v46  ;;  %v1205_v35 = vpop.f32.mrb[1].mxu0 }
 0x1c4   : > { %v1206_v36 = vadd.f32 %v1205_v35, %v4830_v30  ;;  %v3850_v40 = vpop.f32.mrb[2].mxu0 }
 0x1c5   : > { %v1217_v41 = vadd.f32 %v3850_v40, %v4855_v45  ;;  %v1208_v44 = vpop.f32.mrb[3].mxu0  ;;  %v1462_v48 = vmax.f32 %v1214_v34, 0.0  ;;  %v5197_v40 = vpop.permute.xlu0 %747 }
 0x1c6   : > { %v1209_v47 = vadd.f32 %v1208_v44, %v4843_v38  ;;  %v1460_v52 = vmax.f32 %v1206_v36, 0.0 }
 0x1c7   : > { %v1463_v51 = vmax.f32 %v1217_v41, 0.0 }
 0x1c8   : > { %v1461_v56 = vmax.f32 %v1209_v47, 0.0 }
 0x1c9   : > { %v1525_v22 = vpack.c.bf16 %v1463_v51, %v1462_v48 }
 0x1ca   : > { %v3853_v60 = vpop.f32.mrb[4].mxu0  ;;  %v1524_v46 = vpack.c.bf16 %v1461_v56, %v1460_v52  ;;  %v5203_v52 = vpop.permute.xlu1 %752 }
 0x1cb   : > { %v1230_v61 = vadd.f32 %v3853_v60, %v4882_v1  ;;  %v1221_v30 = vpop.f32.mrb[5].mxu0 }
 0x1cc   : > { %v1222_v45 = vadd.f32 %v1221_v30, %v4868_v53  ;;  %v3854_v62 = vpop.f32.mrb[6].mxu0  ;;  %2709 = vmatpush1.bf16.msra.mxu1 %v1524_v46 }
 0x1cd   : > { %v1233_v38 = vadd.f32 %v3854_v62, %v4884_v3  ;;  %v1224_v63 = vpop.f32.mrb[7].mxu0  ;;  %2710 = vmatprep.subr.bf16.mxu1 %v4437_v2  ;;  %v1466_v6 = vmax.f32 %v1230_v61, 0.0 }
 0x1ce   : > { %v1225_v5 = vadd.f32 %v1224_v63, %v4870_v54  ;;  %v1464_v8 = vmax.f32 %v1222_v45, 0.0  ;;  %v5212_v62 = vpop.permute.xlu1 %762 }
 0x1cf   : > { %v1467_v7 = vmax.f32 %v1233_v38, 0.0 }
 0x1d0   : > { %v1465_v9 = vmax.f32 %v1225_v5, 0.0  ;;  %2711 = vmatpush1.bf16.msra.mxu1 %v1525_v22 }
 0x1d1   : > { %v1527_v14 = vpack.c.bf16 %v1467_v7, %v1466_v6  ;;  %2712 = vmatprep.subr.bf16.mxu1 %v4437_v2 }
 0x1d2   : > { %v1526_v1 = vpack.c.bf16 %v1465_v9, %v1464_v8  ;;  %v3857_v15 = vpop.f32.mrb[8].mxu0 }
 0x1d3   : > { %v1246_v53 = vadd.f32 %v3857_v15, %v4919_v24  ;;  %v1237_v16 = vpop.f32.mrb[9].mxu0 }
 0x1d4   : > { %v1238_v3 = vadd.f32 %v1237_v16, %v4895_v12  ;;  %v3858_v17 = vpop.f32.mrb[10].mxu0  ;;  %2713 = vmatpush1.bf16.msra.mxu1 %v1526_v1  ;;  %v5219_v1 = vpop.permute.xlu1 %772 }
 0x1d5   : > { %v1249_v20 = vadd.f32 %v3858_v17, %v4921_v25  ;;  %v1240_v54 = vpop.f32.mrb[11].mxu0  ;;  %2714 = vmatprep.subr.bf16.mxu1 %v4437_v2  ;;  %v1470_v23 = vmax.f32 %v1246_v53, 0.0 }
 0x1d6   : > { %v1241_v21 = vadd.f32 %v1240_v54, %v4897_v13  ;;  %v1468_v28 = vmax.f32 %v1238_v3, 0.0 }
 0x1d7   : > { %v1471_v33 = vmax.f32 %v1249_v20, 0.0 }
 0x1d8   : > { %v1469_v29 = vmax.f32 %v1241_v21, 0.0  ;;  %2715 = vmatpush1.bf16.msra.mxu1 %v1527_v14 }
 0x1d9   : > { %v1529_v34 = vpack.c.bf16 %v1471_v33, %v1470_v23  ;;  %2716 = vmatprep.subr.bf16.mxu1 %v4437_v2 }
 0x1da   : > { %v1528_v24 = vpack.c.bf16 %v1469_v29, %v1468_v28  ;;  %v3861_v35 = vpop.f32.mrb[12].mxu0 }
 0x1db   : > { %v1262_v12 = vadd.f32 %v3861_v35, %v4948_v42  ;;  %v1253_v36 = vpop.f32.mrb[13].mxu0 }
 0x1dc   : > { %v1254_v25 = vadd.f32 %v1253_v36, %v4935_v31  ;;  %v3862_v41 = vpop.f32.mrb[14].mxu0  ;;  %2717 = vmatpush1.bf16.msra.mxu1 %v1528_v24  ;;  %v5206_v31 = vpop.permute.xlu0 %757 }
 0x1dd   : > { %v1265_v13 = vadd.f32 %v3862_v41, %v4950_v43  ;;  %v1256_v44 = vpop.f32.mrb[15].mxu0  ;;  %2718 = vmatprep.subr.bf16.mxu1 %v4437_v2  ;;  %v1474_v48 = vmax.f32 %v1262_v12, 0.0 }
 0x1de   : > { %v1257_v47 = vadd.f32 %v1256_v44, %v4937_v32  ;;  %v1472_v56 = vmax.f32 %v1254_v25, 0.0 }
 0x1df   : > { %v1475_v51 = vmax.f32 %v1265_v13, 0.0 }
 0x1e0   : > { %v1473_v42 = vmax.f32 %v1257_v47, 0.0  ;;  %2719 = vmatpush1.bf16.msra.mxu1 %v1529_v34  ;;  %v5215_v6 = vpop.permute.xlu0 %767 }
 0x1e1   : > { %v1531_v22 = vpack.c.bf16 %v1475_v51, %v1474_v48  ;;  %2720 = vmatprep.subr.bf16.mxu1 %v4437_v2 }
 0x1e2   : > { %v1530_v59 = vpack.c.bf16 %v1473_v42, %v1472_v56  ;;  %v3865_v60 = vpop.f32.mrb[16].mxu0 }
 0x1e3   : > { %v1278_v43 = vadd.f32 %v3865_v60, %v4983_v0  ;;  %v1269_v46 = vpop.f32.mrb[17].mxu0 }
 0x1e4   : > { %v1270_v61 = vadd.f32 %v1269_v46, %v4962_v57  ;;  %v3866_v32 = vpop.f32.mrb[18].mxu0  ;;  %2721 = vmatpush1.bf16.msra.mxu1 %v1530_v59  ;;  %v5224_v3 = vpop.permute.xlu0 %777 }
 0x1e5   : > { %v1281_v30 = vadd.f32 %v3866_v32, %v4985_v4  ;;  %v1272_v45 = vpop.f32.mrb[19].mxu0  ;;  %2722 = vmatprep.subr.bf16.mxu1 %v4437_v2  ;;  %v1478_v63 = vmax.f32 %v1278_v43, 0.0 }
 0x1e6   : > { %v1273_v38 = vadd.f32 %v1272_v45, %v4964_v58  ;;  %v1476_v7 = vmax.f32 %v1270_v61, 0.0 }
 0x1e7   : > { %v1479_v5 = vmax.f32 %v1281_v30, 0.0 }
 0x1e8   : > { %v1477_v0 = vmax.f32 %v1273_v38, 0.0  ;;  %2723 = vmatpush1.bf16.msra.mxu1 %v1531_v22  ;;  %v5231_v34 = vpop.permute.xlu0 %787 }
 0x1e9   : > { %v1533_v8 = vpack.c.bf16 %v1479_v5, %v1478_v63  ;;  %2724 = vmatprep.subr.bf16.mxu1 %v4437_v2 }
 0x1ea   : > { %v1532_v57 = vpack.c.bf16 %v1477_v0, %v1476_v7  ;;  %v3869_v9 = vpop.f32.mrb[20].mxu0 }
 0x1eb   : > { %v1294_v4 = vadd.f32 %v3869_v9, %v5021_v18  ;;  %v1285_v14 = vpop.f32.mrb[21].mxu0 }
 0x1ec   : > { %v1286_v15 = vadd.f32 %v1285_v14, %v5003_v10  ;;  %v3870_v58 = vpop.f32.mrb[22].mxu0  ;;  %2725 = vmatpush1.bf16.msra.mxu1 %v1532_v57  ;;  %v5228_v10 = vpop.permute.xlu1 %782 }
 0x1ed   : > { %v1297_v53 = vadd.f32 %v3870_v58, %v5023_v19  ;;  %v1288_v16 = vpop.f32.mrb[23].mxu0  ;;  %2726 = vmatprep.subr.bf16.mxu1 %v4437_v2  ;;  %v1482_v20 = vmax.f32 %v1294_v4, 0.0 }
 0x1ee   : > { %v1289_v17 = vadd.f32 %v1288_v16, %v5005_v11  ;;  %v1480_v21 = vmax.f32 %v1286_v15, 0.0 }
 0x1ef   : > { %v1483_v54 = vmax.f32 %v1297_v53, 0.0 }
 0x1f0   : > { %v1481_v18 = vmax.f32 %v1289_v17, 0.0  ;;  %2727 = vmatpush1.bf16.msra.mxu1 %v1533_v8  ;;  %v5237_v13 = vpop.permute.xlu1 %792  ;;  %v4176_v17 = vld [vmem:[%s6086_s5 + $0x24] ss:$16 sps:$4 sm:$0xff]  }
 0x1f1   : > { %v1535_v23 = vpack.c.bf16 %v1483_v54, %v1482_v20  ;;  %2728 = vmatprep.subr.bf16.mxu1 %v4437_v2 }
 0x1f2   : > { %v1534_v33 = vpack.c.bf16 %v1481_v18, %v1480_v21  ;;  %v3873_v28 = vpop.f32.mrb[24].mxu0 }
 0x1f3   : > { %v1310_v19 = vadd.f32 %v3873_v28, %v5059_v37  ;;  %v1301_v29 = vpop.f32.mrb[25].mxu0 }
 0x1f4   : > { %v1302_v24 = vadd.f32 %v1301_v29, %v5039_v26  ;;  %v3874_v11 = vpop.f32.mrb[26].mxu0  ;;  %2729 = vmatpush1.bf16.msra.mxu1 %v1534_v33  ;;  %v5240_v26 = vpop.permute.xlu0 %797  ;;  %v4178_v29 = vld [vmem:[%s6086_s5 + $0x20] ss:$16 sps:$4 sm:$0xff]  }
 0x1f5   : > { %v1313_v35 = vadd.f32 %v3874_v11, %v5061_v39  ;;  %v1304_v12 = vpop.f32.mrb[27].mxu0  ;;  %2730 = vmatprep.subr.bf16.mxu1 %v4437_v2  ;;  %v1486_v25 = vmax.f32 %v1310_v19, 0.0  ;;  %v5246_v60 = vpop.permute.xlu1 %802 }
 0x1f6   : > { %v1305_v36 = vadd.f32 %v1304_v12, %v5041_v27  ;;  %v1484_v44 = vmax.f32 %v1302_v24, 0.0 }
 0x1f7   : > { %v1487_v41 = vmax.f32 %v1313_v35, 0.0 }
 0x1f8   : > { %v1485_v37 = vmax.f32 %v1305_v36, 0.0  ;;  %2731 = vmatpush1.bf16.msra.mxu1 %v1535_v23  ;;  %v5249_v32 = vpop.permute.xlu0 %807  ;;  %v4179_v36 = vld [vmem:[%s6086_s5 + $0x44] ss:$16 sps:$4 sm:$0xff]  }
 0x1f9   : > { %v1537_v47 = vpack.c.bf16 %v1487_v41, %v1486_v25  ;;  %2732 = vmatprep.subr.bf16.mxu1 %v4437_v2  ;;  %v5253_v5 = vpop.permute.xlu1 %812 }
 0x1fa   : > { %v1536_v48 = vpack.c.bf16 %v1485_v37, %v1484_v44  ;;  %v3877_v51 = vpop.f32.mrb[28].mxu0 }
 0x1fb   : > { %v1326_v39 = vadd.f32 %v3877_v51, %v5091_v55  ;;  %v1317_v56 = vpop.f32.mrb[29].mxu0 }
 0x1fc   : > { %v1318_v42 = vadd.f32 %v1317_v56, %v5079_v49  ;;  %v3878_v27 = vpop.f32.mrb[30].mxu0  ;;  %2733 = vmatpush1.bf16.msra.mxu1 %v1536_v48  ;;  %v5258_v57 = vpop.permute.xlu0 %817 }
 0x1fd   : > { %v1329_v22 = vadd.f32 %v3878_v27, %v5197_v40  ;;  %v1320_v59 = vpop.f32.mrb[31].mxu0  ;;  %2734 = vmatprep.subr.bf16.mxu1 %v4437_v2  ;;  %v1490_v46 = vmax.f32 %v1326_v39, 0.0 }
 0x1fe   : > { %v1321_v43 = vadd.f32 %v1320_v59, %v5081_v50  ;;  %v1488_v30 = vmax.f32 %v1318_v42, 0.0 }
 0x1ff   : > { %v1491_v61 = vmax.f32 %v1329_v22, 0.0 }
 0x200   : > { %v1489_v55 = vmax.f32 %v1321_v43, 0.0  ;;  %2735 = vmatpush1.bf16.msra.mxu1 %v1537_v47  ;;  %v828_v54 = vpop.permute.xlu0 %827 }
 0x201   : > { %v1539_v45 = vpack.c.bf16 %v1491_v61, %v1490_v46  ;;  %2736 = vmatprep.subr.bf16.mxu1 %v4437_v2 }
 0x202   : > { %v1538_v49 = vpack.c.bf16 %v1489_v55, %v1488_v30  ;;  %v3881_v38 = vpop.f32.mrb[32].mxu0 }
 0x203   : > { %v1342_v40 = vadd.f32 %v3881_v38, %v5212_v62  ;;  %v1333_v63 = vpop.f32.mrb[33].mxu0  ;;  %v4173_v62 = vld [vmem:[%s6086_s5] ss:$16 sps:$4 sm:$0xff]  }
 0x204   : > { %v1334_v7 = vadd.f32 %v1333_v63, %v5203_v52  ;;  %v3882_v50 = vpop.f32.mrb[34].mxu0  ;;  %2737 = vmatpush1.bf16.msra.mxu1 %v1538_v49  ;;  %v5281_v35 = vpop.permute.xlu0 %837 }
 0x205   : > { %v1345_v0 = vadd.f32 %v3882_v50, %v5215_v6  ;;  %v1336_v8 = vpop.f32.mrb[35].mxu0  ;;  %2738 = vmatprep.subr.bf16.mxu1 %v4437_v2  ;;  %v1494_v4 = vmax.f32 %v1342_v40, 0.0  ;;  %v823_v6 = vpop.permute.xlu1 %822 }
 0x206   : > { %v1337_v9 = vadd.f32 %v1336_v8, %v5206_v31  ;;  %v1492_v15 = vmax.f32 %v1334_v7, 0.0 }
 0x207   : > { %v1495_v14 = vmax.f32 %v1345_v0, 0.0  ;;  %v4184_v0 = vld [vmem:[%s6086_s5 + $0x60] ss:$16 sps:$4 sm:$0xff]  }
 0x208   : > { %v1493_v58 = vmax.f32 %v1337_v9, 0.0  ;;  %2739 = vmatpush1.bf16.msra.mxu1 %v1539_v45  ;;  %v848_v27 = vpop.permute.xlu0 %847 }
 0x209   : > { %v1541_v52 = vpack.c.bf16 %v1495_v14, %v1494_v4  ;;  %3911 = vmatprep.subr.bf16.mxu1 %v4437_v2 }
 0x20a   : > { %v1540_v53 = vpack.c.bf16 %v1493_v58, %v1492_v15  ;;  %v3885_v16 = vpop.f32.mrb[36].mxu0 }
 0x20b   : > { %v1358_v31 = vadd.f32 %v3885_v16, %v5228_v10  ;;  %v1349_v20 = vpop.f32.mrb[37].mxu0  ;;  %2741 = vmatmul.mubr.bf16.vlgmr.msra.gmra.mrb[0].mxu1 %v4173_v62 }
 0x20c   : > { %v1350_v21 = vadd.f32 %v1349_v20, %v5219_v1  ;;  %v3886_v18 = vpop.f32.mrb[38].mxu0  ;;  %2998 = vmatpush1.bf16.msra.mxu0 %v1540_v53  ;;  %3927 = vmatpush1.bf16.msra.mxu1 %v1540_v53  ;;  %v5277_v1 = vpop.permute.xlu1 %832 }
 0x20d   : > { %v1361_v23 = vadd.f32 %v3886_v18, %v5231_v34  ;;  %v1352_v33 = vpop.f32.mrb[39].mxu0  ;;  %2999 = vmatprep.subr.bf16.mxu0 %v4437_v2  ;;  %3912 = vmatprep.subr.bf16.mxu1 %v4437_v2  ;;  %v1498_v19 = vmax.f32 %v1358_v31, 0.0  ;;  %v858_v40 = vpop.permute.xlu0 %857 }
 0x20e   : > { %v1353_v28 = vadd.f32 %v1352_v33, %v5224_v3  ;;  %2748 = vmatprep.mubr.bf16.mxu1 %v4176_v17  ;;  %v1496_v24 = vmax.f32 %v1350_v21, 0.0  ;;  %v4187_v21 = vld [vmem:[%s6086_s5 + $0x80] ss:$16 sps:$4 sm:$0xff]  }
 0x20f   : > { %v1499_v10 = vmax.f32 %v1361_v23, 0.0 }
 0x210   : > { %v1497_v11 = vmax.f32 %v1353_v28, 0.0  ;;  %3000 = vmatpush1.bf16.msra.mxu0 %v1541_v52  ;;  %3928 = vmatpush1.bf16.msra.mxu1 %v1541_v52  ;;  %v843_v51 = vpop.permute.xlu1 %842 }
 0x211   : > { %v1543_v34 = vpack.c.bf16 %v1499_v10, %v1498_v19  ;;  %3001 = vmatprep.subr.bf16.mxu0 %v4437_v2  ;;  %3913 = vmatprep.subr.bf16.mxu1 %v4437_v2  ;;  %v868_v52 = vpop.permute.xlu0 %867 }
 0x212   : > { %v1542_v3 = vpack.c.bf16 %v1497_v11, %v1496_v24  ;;  %v3889_v12 = vpop.f32.mrb[40].mxu0 }
 0x213   : > { %v1374_v25 = vadd.f32 %v3889_v12, %v5246_v60  ;;  %v1365_v41 = vpop.f32.mrb[41].mxu0  ;;  %2749 = vmatmul.mubr.bf16.gmra.mrb[4].mxu1 %v4178_v29 }
 0x214   : > { %v1366_v44 = vadd.f32 %v1365_v41, %v5237_v13  ;;  %v3890_v37 = vpop.f32.mrb[42].mxu0  ;;  %3002 = vmatpush1.bf16.msra.mxu0 %v1542_v3  ;;  %3929 = vmatpush1.bf16.msra.mxu1 %v1542_v3  ;;  %v4181_v13 = vld [vmem:[%s6086_s5 + $0x40] ss:$16 sps:$4 sm:$0xff]   ;;  %v853_v30 = vpop.permute.xlu1 %852 }
 0x215   : > { %v1377_v47 = vadd.f32 %v3890_v37, %v5249_v32  ;;  %v1368_v48 = vpop.f32.mrb[43].mxu0  ;;  %3003 = vmatprep.subr.bf16.mxu0 %v4437_v2  ;;  %3914 = vmatprep.subr.bf16.mxu1 %v4437_v2  ;;  %v1502_v56 = vmax.f32 %v1374_v25, 0.0  ;;  %v878_v19 = vpop.permute.xlu0 %877  ;;  %v4190_v37 = vld [vmem:[%s6086_s5 + $0xa0] ss:$16 sps:$4 sm:$0xff]  }
 0x216   : > { %v1369_v39 = vadd.f32 %v1368_v48, %v5240_v26  ;;  %2756 = vmatprep.mubr.bf16.mxu1 %v4179_v36  ;;  %v1500_v22 = vmax.f32 %v1366_v44, 0.0  ;;  %v4182_v26 = vld [vmem:[%s6086_s5 + $0x64] ss:$16 sps:$4 sm:$0xff]  }
 0x217   : > { %v1503_v42 = vmax.f32 %v1377_v47, 0.0 }
 0x218   : > { %v1501_v59 = vmax.f32 %v1369_v39, 0.0  ;;  %3004 = vmatpush1.bf16.msra.mxu0 %v1543_v34  ;;  %3930 = vmatpush1.bf16.msra.mxu1 %v1543_v34  ;;  %v863_v4 = vpop.permute.xlu1 %862 }
 0x219   : > { %v1545_v60 = vpack.c.bf16 %v1503_v42, %v1502_v56  ;;  %3005 = vmatprep.subr.bf16.mxu0 %v4437_v2  ;;  %3915 = vmatprep.subr.bf16.mxu1 %v4437_v2  ;;  %v888_v47 = vpop.permute.xlu0 %887 }
 0x21a   : > { %v1544_v43 = vpack.c.bf16 %v1501_v59, %v1500_v22  ;;  %v3893_v46 = vpop.f32.mrb[44].mxu0 }
 0x21b   : > { %v1390_v61 = vadd.f32 %v3893_v46, %v823_v6  ;;  %v1381_v32 = vpop.f32.mrb[45].mxu0  ;;  %2757 = vmatmul.mubr.bf16.gmra.mrb[8].mxu1 %v4181_v13  ;;  %v4191_v13 = vld [vmem:[%s6086_s5 + $0xc4] ss:$16 sps:$4 sm:$0xff]  }
 0x21c   : > { %v1382_v55 = vadd.f32 %v1381_v32, %v5253_v5  ;;  %v3894_v45 = vpop.f32.mrb[46].mxu0  ;;  %3006 = vmatpush1.bf16.msra.mxu0 %v1544_v43  ;;  %3931 = vmatpush1.bf16.msra.mxu1 %v1544_v43  ;;  %v873_v18 = vpop.permute.xlu1 %872 }
 0x21d   : > { %v1393_v49 = vadd.f32 %v3894_v45, %v828_v54  ;;  %v1384_v38 = vpop.f32.mrb[47].mxu0  ;;  %3007 = vmatprep.subr.bf16.mxu0 %v4437_v2  ;;  %3916 = vmatprep.subr.bf16.mxu1 %v4437_v2  ;;  %v1506_v7 = vmax.f32 %v1390_v61, 0.0  ;;  %v898_v61 = vpop.permute.xlu0 %897  ;;  %v4193_v45 = vld [vmem:[%s6086_s5 + $0xc0] ss:$16 sps:$4 sm:$0xff]  }
 0x21e   : > { %v1385_v63 = vadd.f32 %v1384_v38, %v5258_v57  ;;  %2764 = vmatprep.mubr.bf16.mxu1 %v4182_v26  ;;  %v1504_v5 = vmax.f32 %v1382_v55, 0.0  ;;  %v4185_v57 = vld [vmem:[%s6086_s5 + $0x84] ss:$16 sps:$4 sm:$0xff]  }
 0x21f   : > { %v1507_v50 = vmax.f32 %v1393_v49, 0.0 }
 0x220   : > { %v1505_v8 = vmax.f32 %v1385_v63, 0.0  ;;  %3008 = vmatpush1.bf16.msra.mxu0 %v1545_v60  ;;  %3932 = vmatpush1.bf16.msra.mxu1 %v1545_v60  ;;  %v883_v36 = vpop.permute.xlu1 %882 }
 0x221   : > { %v1547_v9 = vpack.c.bf16 %v1507_v50, %v1506_v7  ;;  %3009 = vmatprep.subr.bf16.mxu0 %v4437_v2  ;;  %3917 = vmatprep.subr.bf16.mxu1 %v4437_v2 }
 0x222   : > { %v1546_v14 = vpack.c.bf16 %v1505_v8, %v1504_v5  ;;  %v3897_v62 = vpop.f32.mrb[48].mxu0 }
 0x223   : > { %v1406_v15 = vadd.f32 %v3897_v62, %v843_v51  ;;  %v1397_v58 = vpop.f32.mrb[49].mxu0  ;;  %2765 = vmatmul.mubr.bf16.gmra.mrb[12].mxu1 %v4184_v0  ;;  %v4194_v0 = vld [vmem:[%s6086_s5 + $0xe4] ss:$16 sps:$4 sm:$0xff]  }
 0x224   : > { %v1398_v6 = vadd.f32 %v1397_v58, %v5277_v1  ;;  %v3898_v53 = vpop.f32.mrb[50].mxu0  ;;  %3010 = vmatpush1.bf16.msra.mxu0 %v1546_v14  ;;  %3933 = vmatpush1.bf16.msra.mxu1 %v1546_v14  ;;  %v4188_v1 = vld [vmem:[%s6086_s5 + $0xa4] ss:$16 sps:$4 sm:$0xff]   ;;  %v893_v59 = vpop.permute.xlu1 %892 }
 0x225   : > { %v1409_v16 = vadd.f32 %v3898_v53, %v848_v27  ;;  %v1400_v17 = vpop.f32.mrb[51].mxu0  ;;  %3011 = vmatprep.subr.bf16.mxu0 %v4437_v2  ;;  %3918 = vmatprep.subr.bf16.mxu1 %v4437_v2  ;;  %v1510_v20 = vmax.f32 %v1406_v15, 0.0 }
 0x226   : > { %v1401_v31 = vadd.f32 %v1400_v17, %v5281_v35  ;;  %2772 = vmatprep.mubr.bf16.mxu1 %v4185_v57  ;;  %v1508_v23 = vmax.f32 %v1398_v6, 0.0  ;;  %v4196_v6 = vld [vmem:[%s6086_s5 + $0xe0] ss:$16 sps:$4 sm:$0xff]  }
 0x227   : > { %v1511_v54 = vmax.f32 %v1409_v16, 0.0 }
 0x228   : > { %v1509_v33 = vmax.f32 %v1401_v31, 0.0  ;;  %3012 = vmatpush1.bf16.msra.mxu0 %v1547_v9  ;;  %3934 = vmatpush1.bf16.msra.mxu1 %v1547_v9  ;;  %v903_v63 = vpop.permute.xlu1 %902  ;;  %v908_v9 = vpop.permute.xlu0 %907 }
 0x229   : > { %v1549_v28 = vpack.c.bf16 %v1511_v54, %v1510_v20  ;;  %3013 = vmatprep.subr.bf16.mxu0 %v4437_v2  ;;  %3919 = vmatprep.subr.bf16.mxu1 %v4437_v2  ;;  %v4197_v20 = vld [vmem:[%s6086_s5 + $0x104] ss:$16 sps:$4 sm:$0xff]   ;;  %v4199_v54 = vld [vmem:[%s6086_s5 + $0x8] ss:$16 sps:$4 sm:$0xff]  }
 0x22a   : > { %v1548_v10 = vpack.c.bf16 %v1509_v33, %v1508_v23  ;;  %v3901_v29 = vpop.f32.mrb[52].mxu0  ;;  %v4205_v23 = vld [vmem:[%s6086_s5 + $0x2c] ss:$16 sps:$4 sm:$0xff]   ;;  %v4208_v33 = vld [vmem:[%s6086_s5 + $0x28] ss:$16 sps:$4 sm:$0xff]  }
 0x22b   : > { %v1422_v24 = vadd.f32 %v3901_v29, %v863_v4  ;;  %v1413_v11 = vpop.f32.mrb[53].mxu0  ;;  %2773 = vmatmul.mubr.bf16.gmra.mrb[16].mxu1 %v4187_v21  ;;  %v4202_v21 = vld [vmem:[%s6086_s5 + $0x100] ss:$16 sps:$4 sm:$0xff]   ;;  %v4214_v29 = vld [vmem:[%s6086_s5 + $0x48] ss:$16 sps:$4 sm:$0xff]  }
 0x22c   : > { %v1414_v34 = vadd.f32 %v1413_v11, %v853_v30  ;;  %v3902_v35 = vpop.f32.mrb[54].mxu0  ;;  %3014 = vmatpush1.bf16.msra.mxu0 %v1548_v10  ;;  %3935 = vmatpush1.bf16.msra.mxu1 %v1548_v10  ;;  %v4213_v10 = vld [vmem:[%s6086_s5 + $0x140] ss:$16 sps:$4 sm:$0xff]  }
 0x22d   : > { %v1425_v3 = vadd.f32 %v3902_v35, %v868_v52  ;;  %v1416_v12 = vpop.f32.mrb[55].mxu0  ;;  %3015 = vmatprep.subr.bf16.mxu0 %v4437_v2  ;;  %3920 = vmatprep.subr.bf16.mxu1 %v4437_v2  ;;  %v1514_v41 = vmax.f32 %v1422_v24, 0.0  ;;  %v4217_v24 = vld [vmem:[%s6086_s5 + $0x6c] ss:$16 sps:$4 sm:$0xff]   ;;  %v4219_v11 = vld [vmem:[%s6086_s5 + $0x160] ss:$16 sps:$4 sm:$0xff]  }
 0x22e   : > { %v1417_v25 = vadd.f32 %v1416_v12, %v858_v40  ;;  %2780 = vmatprep.mubr.bf16.mxu1 %v4188_v1  ;;  %v1512_v48 = vmax.f32 %v1414_v34, 0.0  ;;  %v4215_v1 = vld [vmem:[%s6086_s5 + $0x164] ss:$16 sps:$4 sm:$0xff]   ;;  %v4220_v34 = vld [vmem:[%s6086_s5 + $0x68] ss:$16 sps:$4 sm:$0xff]  }
 0x22f   : > { %v1515_v44 = vmax.f32 %v1425_v3, 0.0  ;;  %v4221_v35 = vld [vmem:[%s6086_s5 + $0x184] ss:$16 sps:$4 sm:$0xff]   ;;  %v4223_v3 = vld [vmem:[%s6086_s5 + $0x8c] ss:$16 sps:$4 sm:$0xff]  }
 0x230   : > { %v1513_v51 = vmax.f32 %v1417_v25, 0.0  ;;  %3016 = vmatpush1.bf16.msra.mxu0 %v1549_v28  ;;  %3936 = vmatpush1.bf16.msra.mxu1 %v1549_v28  ;;  %v4209_v28 = vld [vmem:[%s6086_s5 + $0x144] ss:$16 sps:$4 sm:$0xff]   ;;  %v4225_v12 = vld [vmem:[%s6086_s5 + $0x180] ss:$16 sps:$4 sm:$0xff]  }
 0x231   : > { %v1551_v39 = vpack.c.bf16 %v1515_v44, %v1514_v41  ;;  %3017 = vmatprep.subr.bf16.mxu0 %v4437_v2  ;;  %3921 = vmatprep.subr.bf16.mxu1 %v4437_v2  ;;  %v4227_v25 = vld [vmem:[%s6086_s5 + $0x1a4] ss:$16 sps:$4 sm:$0xff]   ;;  %v4229_v41 = vld [vmem:[%s6086_s5 + $0xac] ss:$16 sps:$4 sm:$0xff]   ;;  %v4231_v44 = vld [vmem:[%s6086_s5 + $0x1a0] ss:$16 sps:$4 sm:$0xff]  }
 0x232   : > { %v1550_v56 = vpack.c.bf16 %v1513_v51, %v1512_v48  ;;  %v3905_v42 = vpop.f32.mrb[56].mxu0  ;;  %v4235_v48 = vld [vmem:[%s6086_s5 + $0xcc] ss:$16 sps:$4 sm:$0xff]   ;;  %v4237_v51 = vld [vmem:[%s6086_s5 + $0x1c0] ss:$16 sps:$4 sm:$0xff]  }
 0x233   : > { %v1438_v27 = vadd.f32 %v3905_v42, %v883_v36  ;;  %v1429_v22 = vpop.f32.mrb[57].mxu0  ;;  %2781 = vmatmul.mubr.bf16.gmra.mrb[20].mxu1 %v4190_v37  ;;  %v4226_v36 = vld [vmem:[%s6086_s5 + $0x88] ss:$16 sps:$4 sm:$0xff]   ;;  %v4241_v42 = vld [vmem:[%s6086_s5 + $0xec] ss:$16 sps:$4 sm:$0xff]  }
 0x234   : > { %v1430_v60 = vadd.f32 %v1429_v22, %v873_v18  ;;  %v3906_v43 = vpop.f32.mrb[58].mxu0  ;;  %3018 = vmatpush1.bf16.msra.mxu0 %v1550_v56  ;;  %3937 = vmatpush1.bf16.msra.mxu1 %v1550_v56  ;;  %v4203_v18 = vld [vmem:[%s6086_s5 + $0x124] ss:$16 sps:$4 sm:$0xff]   ;;  %v4232_v37 = vld [vmem:[%s6086_s5 + $0xa8] ss:$16 sps:$4 sm:$0xff]  }
 0x235   : > { %v1441_v46 = vadd.f32 %v3906_v43, %v888_v47  ;;  %v1432_v26 = vpop.f32.mrb[59].mxu0  ;;  %3019 = vmatprep.subr.bf16.mxu0 %v4437_v2  ;;  %3922 = vmatprep.subr.bf16.mxu1 %v4437_v2  ;;  %v1518_v30 = vmax.f32 %v1438_v27, 0.0  ;;  %v4233_v47 = vld [vmem:[%s6086_s5 + $0x1c4] ss:$16 sps:$4 sm:$0xff]   ;;  %v4244_v27 = vld [vmem:[%s6086_s5 + $0xe8] ss:$16 sps:$4 sm:$0xff]  }
 0x236   : > { %v1433_v32 = vadd.f32 %v1432_v26, %v878_v19  ;;  %2788 = vmatprep.mubr.bf16.mxu1 %v4191_v13  ;;  %v1516_v49 = vmax.f32 %v1430_v60, 0.0  ;;  %v4211_v19 = vld [vmem:[%s6086_s5 + $0x4c] ss:$16 sps:$4 sm:$0xff]   ;;  %v4239_v56 = vld [vmem:[%s6086_s5 + $0x1e4] ss:$16 sps:$4 sm:$0xff]  }
 0x237   : > { %v1519_v55 = vmax.f32 %v1441_v46, 0.0  ;;  %v4243_v13 = vld [vmem:[%s6086_s5 + $0x1e0] ss:$16 sps:$4 sm:$0xff]   ;;  %v4245_v22 = vld [vmem:[%s6086_s5 + $0x204] ss:$16 sps:$4 sm:$0xff]  }
 0x238   : > { %v1517_v38 = vmax.f32 %v1433_v32, 0.0  ;;  %3020 = vmatpush1.bf16.msra.mxu0 %v1551_v39  ;;  %3938 = vmatpush1.bf16.msra.mxu1 %v1551_v39  ;;  %v4238_v39 = vld [vmem:[%s6086_s5 + $0xc8] ss:$16 sps:$4 sm:$0xff]   ;;  %v4249_v60 = vld [vmem:[%s6086_s5 + $0x200] ss:$16 sps:$4 sm:$0xff]  }
 0x239   : > { %v1553_v40 = vpack.c.bf16 %v1519_v55, %v1518_v30  ;;  %3021 = vmatprep.subr.bf16.mxu0 %v4437_v2  ;;  %3923 = vmatprep.subr.bf16.mxu1 %v4437_v2  ;;  %v4250_v43 = vld [vmem:[%s6086_s5 + $0x108] ss:$16 sps:$4 sm:$0xff]   ;;  %v4251_v46 = vld [vmem:[%s6086_s5 + $0x224] ss:$16 sps:$4 sm:$0xff]   ;;  %v4253_v26 = vld [vmem:[%s6086_s5 + $0x12c] ss:$16 sps:$4 sm:$0xff]  }
 0x23a   : > { %v1552_v7 = vpack.c.bf16 %v1517_v38, %v1516_v49  ;;  %v3909_v50 = vpop.f32.mrb[60].mxu0  ;;  %v4256_v32 = vld [vmem:[%s6086_s5 + $0x128] ss:$16 sps:$4 sm:$0xff]   ;;  %v4257_v30 = vld [vmem:[%s6086_s5 + $0x244] ss:$16 sps:$4 sm:$0xff]  }
 0x23b   : > { %v1454_v5 = vadd.f32 %v3909_v50, %v903_v63  ;;  %v1445_v8 = vpop.f32.mrb[61].mxu0  ;;  %2789 = vmatmul.mubr.bf16.gmra.mrb[24].mxu1 %v4193_v45  ;;  %v4259_v55 = vld [vmem:[%s6086_s5 + $0x14c] ss:$16 sps:$4 sm:$0xff]   ;;  %v4261_v45 = vld [vmem:[%s6086_s5 + $0x240] ss:$16 sps:$4 sm:$0xff]  }
 0x23c   : > { %v1446_v4 = vadd.f32 %v1445_v8, %v893_v59  ;;  %v3910_v14 = vpop.f32.mrb[62].mxu0  ;;  %3022 = vmatpush1.bf16.msra.mxu0 %v1552_v7  ;;  %3939 = vmatpush1.bf16.msra.mxu1 %v1552_v7  ;;  %v4247_v59 = vld [vmem:[%s6086_s5 + $0x10c] ss:$16 sps:$4 sm:$0xff]   ;;  %v4262_v49 = vld [vmem:[%s6086_s5 + $0x148] ss:$16 sps:$4 sm:$0xff]  }
 0x23d   : > { %v1457_v62 = vadd.f32 %v3910_v14, %v908_v9  ;;  %v1448_v57 = vpop.f32.mrb[63].mxu0  ;;  %3023 = vmatprep.subr.bf16.mxu0 %v4437_v2  ;;  %3924 = vmatprep.subr.bf16.mxu1 %v4437_v2  ;;  %v1522_v58 = vmax.f32 %v1454_v5, 0.0  ;;  %v4263_v38 = vld [vmem:[%s6086_s5 + $0x264] ss:$16 sps:$4 sm:$0xff]   ;;  %v4267_v63 = vld [vmem:[%s6086_s5 + $0x260] ss:$16 sps:$4 sm:$0xff]  }
 0x23e   : > { %v1449_v15 = vadd.f32 %v1448_v57, %v898_v61  ;;  %2796 = vmatprep.mubr.bf16.mxu1 %v4194_v0  ;;  %v1520_v53 = vmax.f32 %v1446_v4, 0.0  ;;  %v4255_v61 = vld [vmem:[%s6086_s5 + $0x220] ss:$16 sps:$4 sm:$0xff]   ;;  %v4268_v7 = vld [vmem:[%s6086_s5 + $0x168] ss:$16 sps:$4 sm:$0xff]  }
 0x23f   : > { %v1523_v52 = vmax.f32 %v1457_v62, 0.0  ;;  %v4269_v50 = vld [vmem:[%s6086_s5 + $0x284] ss:$16 sps:$4 sm:$0xff]   ;;  %v4271_v0 = vld [vmem:[%s6086_s5 + $0x18c] ss:$16 sps:$4 sm:$0xff]  }
 0x240   : > { %v1521_v16 = vmax.f32 %v1449_v15, 0.0  ;;  %3024 = vmatpush1.bf16.msra.mxu0 %v1553_v40  ;;  %3940 = vmatpush1.bf16.msra.mxu1 %v1553_v40  ;;  %v4265_v40 = vld [vmem:[%s6086_s5 + $0x16c] ss:$16 sps:$4 sm:$0xff]   ;;  %v4273_v5 = vld [vmem:[%s6086_s5 + $0x280] ss:$16 sps:$4 sm:$0xff]  }
 0x241   : > { %v1555_v17 = vpack.c.bf16 %v1523_v52, %v1522_v58  ;;  %3025 = vmatprep.subr.bf16.mxu0 %v4437_v2  ;;  %3925 = vmatprep.subr.bf16.mxu1 %v4437_v2  ;;  %v4274_v8 = vld [vmem:[%s6086_s5 + $0x188] ss:$16 sps:$4 sm:$0xff]   ;;  %v4275_v9 = vld [vmem:[%s6086_s5 + $0x2a4] ss:$16 sps:$4 sm:$0xff]   ;;  %v4277_v4 = vld [vmem:[%s6086_s5 + $0x1ac] ss:$16 sps:$4 sm:$0xff]  }
 0x242   : > { %v1554_v31 = vpack.c.bf16 %v1521_v16, %v1520_v53  ;;  %v4279_v14 = vld [vmem:[%s6086_s5 + $0x2a0] ss:$16 sps:$4 sm:$0xff]   ;;  %v4280_v62 = vld [vmem:[%s6086_s5 + $0x1a8] ss:$16 sps:$4 sm:$0xff]   ;;  %v4281_v57 = vld [vmem:[%s6086_s5 + $0x2c4] ss:$16 sps:$4 sm:$0xff]  }
 0x243   : > { %2797 = vmatmul.mubr.bf16.gmra.mrb[28].mxu1 %v4196_v6  ;;  %v4283_v15 = vld [vmem:[%s6086_s5 + $0x1cc] ss:$16 sps:$4 sm:$0xff]   ;;  %v4285_v58 = vld [vmem:[%s6086_s5 + $0x2c0] ss:$16 sps:$4 sm:$0xff]   ;;  %v4286_v52 = vld [vmem:[%s6086_s5 + $0x1c8] ss:$16 sps:$4 sm:$0xff]  }
 0x244   : > { %3026 = vmatpush1.bf16.msra.mxu0 %v1554_v31  ;;  %3941 = vmatpush1.bf16.msra.mxu1 %v1554_v31  ;;  %v4287_v6 = vld [vmem:[%s6086_s5 + $0x2e4] ss:$16 sps:$4 sm:$0xff]   ;;  %v4289_v53 = vld [vmem:[%s6086_s5 + $0x1ec] ss:$16 sps:$4 sm:$0xff]   ;;  %v4291_v16 = vld [vmem:[%s6086_s5 + $0x2e0] ss:$16 sps:$4 sm:$0xff]  }
 0x245   : > { %3027 = vmatprep.subr.bf16.mxu0 %v4437_v2  ;;  %3926 = vmatprep.subr.bf16.mxu1 %v4437_v2  ;;  %v4207_v2 = vld [vmem:[%s6086_s5 + $0x120] ss:$16 sps:$4 sm:$0xff]   ;;  %v4293_v31 = vld [vmem:[%s6086_s5 + $0x304] ss:$16 sps:$4 sm:$0xff]  }
 0x246   : > { %2804 = vmatprep.mubr.bf16.mxu1 %v4197_v20  ;;  %v4295_v20 = vld [vmem:[%s6086_s5 + $0x20c] ss:$16 sps:$4 sm:$0xff]  }
 0x248   : > { %3028 = vmatpush1.bf16.msra.mxu0 %v1555_v17  ;;  %3942 = vmatpush1.bf16.msra.mxu1 %v1555_v17  ;;  %v4292_v17 = vld [vmem:[%s6086_s5 + $0x1e8] ss:$16 sps:$4 sm:$0xff]  }
 0x24b   : > { %2805 = vmatmul.mubr.bf16.gmra.mrb[32].mxu1 %v4202_v21  ;;  %3030 = vmatmul.mubr.bf16.vlgmr.msra.gmra.mrb[64].mxu0 %v4199_v54  ;;  %v4297_v54 = vld [vmem:[%s6086_s5 + $0x300] ss:$16 sps:$4 sm:$0xff]   ;;  %v4298_v21 = vld [vmem:[%s6086_s5 + $0x208] ss:$16 sps:$4 sm:$0xff]  }
 0x24c   : > { %2812 = vmatprep.mubr.bf16.mxu1 %v4203_v18  ;;  %3037 = vmatprep.mubr.bf16.mxu0 %v4205_v23  ;;  %v4299_v18 = vld [vmem:[%s6086_s5 + $0x324] ss:$16 sps:$4 sm:$0xff]   ;;  %v4301_v23 = vld [vmem:[%s6086_s5 + $0x22c] ss:$16 sps:$4 sm:$0xff]  }
 0x253   : > { %2813 = vmatmul.mubr.bf16.gmra.mrb[36].mxu1 %v4207_v2  ;;  %3038 = vmatmul.mubr.bf16.gmra.mrb[68].mxu0 %v4208_v33  ;;  %v4303_v2 = vld [vmem:[%s6086_s5 + $0x320] ss:$16 sps:$4 sm:$0xff]   ;;  %v4304_v33 = vld [vmem:[%s6086_s5 + $0x228] ss:$16 sps:$4 sm:$0xff]  }
 0x254   : > { %2820 = vmatprep.mubr.bf16.mxu1 %v4209_v28  ;;  %3045 = vmatprep.mubr.bf16.mxu0 %v4211_v19  ;;  %v4305_v28 = vld [vmem:[%s6086_s5 + $0x344] ss:$16 sps:$4 sm:$0xff]   ;;  %v4307_v19 = vld [vmem:[%s6086_s5 + $0x24c] ss:$16 sps:$4 sm:$0xff]  }
 0x25b   : > { %2821 = vmatmul.mubr.bf16.gmra.mrb[40].mxu1 %v4213_v10  ;;  %3046 = vmatmul.mubr.bf16.gmra.mrb[72].mxu0 %v4214_v29  ;;  %v4309_v10 = vld [vmem:[%s6086_s5 + $0x340] ss:$16 sps:$4 sm:$0xff]   ;;  %v4310_v29 = vld [vmem:[%s6086_s5 + $0x248] ss:$16 sps:$4 sm:$0xff]  }
 0x25c   : > { %2828 = vmatprep.mubr.bf16.mxu1 %v4215_v1  ;;  %3053 = vmatprep.mubr.bf16.mxu0 %v4217_v24  ;;  %v4311_v1 = vld [vmem:[%s6086_s5 + $0x364] ss:$16 sps:$4 sm:$0xff]   ;;  %v4313_v24 = vld [vmem:[%s6086_s5 + $0x26c] ss:$16 sps:$4 sm:$0xff]  }
 0x263   : > { %2829 = vmatmul.mubr.bf16.gmra.mrb[44].mxu1 %v4219_v11  ;;  %3054 = vmatmul.mubr.bf16.gmra.mrb[76].mxu0 %v4220_v34 }
 0x264   : > { %2836 = vmatprep.mubr.bf16.mxu1 %v4221_v35  ;;  %3061 = vmatprep.mubr.bf16.mxu0 %v4223_v3  ;;  %v4315_v35 = vld [vmem:[%s6086_s5 + $0x360] ss:$16 sps:$4 sm:$0xff]   ;;  %v4316_v3 = vld [vmem:[%s6086_s5 + $0x268] ss:$16 sps:$4 sm:$0xff]  }
 0x26b   : > { %2837 = vmatmul.mubr.bf16.gmra.mrb[48].mxu1 %v4225_v12  ;;  %3062 = vmatmul.mubr.bf16.gmra.mrb[80].mxu0 %v4226_v36  ;;  %v4317_v36 = vld [vmem:[%s6086_s5 + $0x384] ss:$16 sps:$4 sm:$0xff]  }
 0x26c   : > { %2844 = vmatprep.mubr.bf16.mxu1 %v4227_v25  ;;  %3069 = vmatprep.mubr.bf16.mxu0 %v4229_v41  ;;  %v4319_v25 = vld [vmem:[%s6086_s5 + $0x28c] ss:$16 sps:$4 sm:$0xff]  }
 0x273   : > { %2845 = vmatmul.mubr.bf16.gmra.mrb[52].mxu1 %v4231_v44  ;;  %3070 = vmatmul.mubr.bf16.gmra.mrb[84].mxu0 %v4232_v37 }
 0x274   : > { %2852 = vmatprep.mubr.bf16.mxu1 %v4233_v47  ;;  %3077 = vmatprep.mubr.bf16.mxu0 %v4235_v48  ;;  %v4321_v47 = vld [vmem:[%s6086_s5 + $0x380] ss:$16 sps:$4 sm:$0xff]   ;;  %v4322_v48 = vld [vmem:[%s6086_s5 + $0x288] ss:$16 sps:$4 sm:$0xff]  }
 0x27b   : > { %2853 = vmatmul.mubr.bf16.gmra.mrb[56].mxu1 %v4237_v51  ;;  %3078 = vmatmul.mubr.bf16.gmra.mrb[88].mxu0 %v4238_v39  ;;  %v4323_v39 = vld [vmem:[%s6086_s5 + $0x3a4] ss:$16 sps:$4 sm:$0xff]  }
 0x27c   : > { %2860 = vmatprep.mubr.bf16.mxu1 %v4239_v56  ;;  %3085 = vmatprep.mubr.bf16.mxu0 %v4241_v42  ;;  %v4325_v56 = vld [vmem:[%s6086_s5 + $0x2ac] ss:$16 sps:$4 sm:$0xff]  }
 0x283   : > { %2861 = vmatmul.mubr.bf16.gmra.mrb[60].mxu1 %v4243_v13  ;;  %3086 = vmatmul.mubr.bf16.gmra.mrb[92].mxu0 %v4244_v27  ;;  %v5616_v13 = vpop.permute.xlu0 %1835  ;;  %v5618_v27 = vpop.permute.xlu1 %1830 }
 0x284   : > { %2868 = vmatprep.mubr.bf16.mxu1 %v4245_v22  ;;  %3093 = vmatprep.mubr.bf16.mxu0 %v4247_v59 }
 0x28b   : > { %2869 = vmatmul.mubr.bf16.gmra.mrb[64].mxu1 %v4249_v60  ;;  %3094 = vmatmul.mubr.bf16.gmra.mrb[96].mxu0 %v4250_v43  ;;  %v4327_v60 = vld [vmem:[%s6086_s5 + $0x3a0] ss:$16 sps:$4 sm:$0xff]   ;;  %v4328_v43 = vld [vmem:[%s6086_s5 + $0x2a8] ss:$16 sps:$4 sm:$0xff]  }
 0x28c   : > { %2876 = vmatprep.mubr.bf16.mxu1 %v4251_v46  ;;  %3101 = vmatprep.mubr.bf16.mxu0 %v4253_v26  ;;  %v4329_v26 = vld [vmem:[%s6086_s5 + $0x3c4] ss:$16 sps:$4 sm:$0xff]  }
 0x293   : > { %2877 = vmatmul.mubr.bf16.gmra.mrb[68].mxu1 %v4255_v61  ;;  %3102 = vmatmul.mubr.bf16.gmra.mrb[100].mxu0 %v4256_v32  ;;  %v4331_v61 = vld [vmem:[%s6086_s5 + $0x2cc] ss:$16 sps:$4 sm:$0xff]  }
 0x294   : > { %2884 = vmatprep.mubr.bf16.mxu1 %v4257_v30  ;;  %3109 = vmatprep.mubr.bf16.mxu0 %v4259_v55  ;;  %v5636_v30 = vpop.permute.xlu0 %1755  ;;  %v5638_v55 = vpop.permute.xlu1 %1750 }
 0x29b   : > { %2885 = vmatmul.mubr.bf16.gmra.mrb[72].mxu1 %v4261_v45  ;;  %3110 = vmatmul.mubr.bf16.gmra.mrb[104].mxu0 %v4262_v49 }
 0x29c   : > { %2892 = vmatprep.mubr.bf16.mxu1 %v4263_v38  ;;  %3117 = vmatprep.mubr.bf16.mxu0 %v4265_v40  ;;  %v4333_v38 = vld [vmem:[%s6086_s5 + $0x3c0] ss:$16 sps:$4 sm:$0xff]   ;;  %v4334_v40 = vld [vmem:[%s6086_s5 + $0x2c8] ss:$16 sps:$4 sm:$0xff]  }
 0x2a3   : > { %2893 = vmatmul.mubr.bf16.gmra.mrb[76].mxu1 %v4267_v63  ;;  %3118 = vmatmul.mubr.bf16.gmra.mrb[108].mxu0 %v4268_v7  ;;  %v5648_v63 = vpop.permute.xlu0 %1845 }
 0x2a4   : > { %2900 = vmatprep.mubr.bf16.mxu1 %v4269_v50  ;;  %3125 = vmatprep.mubr.bf16.mxu0 %v4271_v0  ;;  %v4335_v50 = vld [vmem:[%s6086_s5 + $0x3e4] ss:$16 sps:$4 sm:$0xff]   ;;  %v4337_v0 = vld [vmem:[%s6086_s5 + $0x2ec] ss:$16 sps:$4 sm:$0xff]  }
 0x2ab   : > { %2901 = vmatmul.mubr.bf16.gmra.mrb[80].mxu1 %v4273_v5  ;;  %3126 = vmatmul.mubr.bf16.gmra.mrb[112].mxu0 %v4274_v8  ;;  %v5658_v5 = vpop.permute.xlu1 %1840 }
 0x2ac   : > { %2908 = vmatprep.mubr.bf16.mxu1 %v4275_v9  ;;  %3133 = vmatprep.mubr.bf16.mxu0 %v4277_v4  ;;  %v5660_v9 = vpop.permute.xlu0 %1765 }
 0x2b3   : > { %2909 = vmatmul.mubr.bf16.gmra.mrb[84].mxu1 %v4279_v14  ;;  %3134 = vmatmul.mubr.bf16.gmra.mrb[116].mxu0 %v4280_v62  ;;  %v5664_v14 = vpop.permute.xlu1 %1760 }
 0x2b4   : > { %2916 = vmatprep.mubr.bf16.mxu1 %v4281_v57  ;;  %3141 = vmatprep.mubr.bf16.mxu0 %v4283_v15  ;;  %v4339_v57 = vld [vmem:[%s6086_s5 + $0x3e0] ss:$16 sps:$4 sm:$0xff]   ;;  %v4340_v15 = vld [vmem:[%s6086_s5 + $0x2e8] ss:$16 sps:$4 sm:$0xff]  }
 0x2bb   : > { %2917 = vmatmul.mubr.bf16.gmra.mrb[88].mxu1 %v4285_v58  ;;  %3142 = vmatmul.mubr.bf16.gmra.mrb[120].mxu0 %v4286_v52  ;;  %v4341_v52 = vld [vmem:[%s6086_s5 + $0x30c] ss:$16 sps:$4 sm:$0xff]  }
 0x2bc   : > { %2924 = vmatprep.mubr.bf16.mxu1 %v4287_v6  ;;  %3149 = vmatprep.mubr.bf16.mxu0 %v4289_v53  ;;  %v4345_v6 = vld [vmem:[%s6086_s5 + $0x32c] ss:$16 sps:$4 sm:$0xff]  }
 0x2c3   : > { %2925 = vmatmul.mubr.bf16.gmra.mrb[92].mxu1 %v4291_v16  ;;  %3150 = vmatmul.mubr.bf16.gmra.mrb[124].mxu0 %v4292_v17  ;;  %v5680_v16 = vpop.permute.xlu0 %1855  ;;  %v5682_v17 = vpop.permute.xlu1 %1850 }
 0x2c4   : > { %2932 = vmatprep.mubr.bf16.mxu1 %v4293_v31  ;;  %3157 = vmatprep.mubr.bf16.mxu0 %v4295_v20 }
 0x2cb   : > { %2933 = vmatmul.mubr.bf16.gmra.mrb[96].mxu1 %v4297_v54  ;;  %3158 = vmatmul.mubr.bf16.gmra.mrb[128].mxu0 %v4298_v21  ;;  %v4343_v54 = vld [vmem:[%s6086_s5 + $0x328] ss:$16 sps:$4 sm:$0xff]  }
 0x2cc   : > { %2940 = vmatprep.mubr.bf16.mxu1 %v4299_v18  ;;  %3165 = vmatprep.mubr.bf16.mxu0 %v4301_v23  ;;  %v4346_v21 = vld [vmem:[%s6086_s5 + $0x308] ss:$16 sps:$4 sm:$0xff]   ;;  %v4347_v23 = vld [vmem:[%s6086_s5 + $0x34c] ss:$16 sps:$4 sm:$0xff]  }
 0x2d3   : > { %2941 = vmatmul.mubr.bf16.gmra.mrb[100].mxu1 %v4303_v2  ;;  %3166 = vmatmul.mubr.bf16.gmra.mrb[132].mxu0 %v4304_v33  ;;  %v5697_v33 = vpop.permute.xlu0 %1775 }
 0x2d4   : > { %2948 = vmatprep.mubr.bf16.mxu1 %v4305_v28  ;;  %3173 = vmatprep.mubr.bf16.mxu0 %v4307_v19  ;;  %v5699_v28 = vpop.permute.xlu1 %1770 }
 0x2db   : > { %2949 = vmatmul.mubr.bf16.gmra.mrb[104].mxu1 %v4309_v10  ;;  %3174 = vmatmul.mubr.bf16.gmra.mrb[136].mxu0 %v4310_v29  ;;  %v4349_v29 = vld [vmem:[%s6086_s5 + $0x348] ss:$16 sps:$4 sm:$0xff]  }
 0x2dc   : > { %2956 = vmatprep.mubr.bf16.mxu1 %v4311_v1  ;;  %3181 = vmatprep.mubr.bf16.mxu0 %v4313_v24  ;;  %v5706_v1 = vpop.permute.xlu0 %1865 }
 0x2de   : > { %v5584_v11 = vpop.f32.mrb[0].mxu1 }
 0x2df   : > { %v2744_v34 = vpop.f32.mrb[1].mxu1 }
 0x2e0   : > { %v5592_v12 = vpop.f32.mrb[2].mxu1  ;;  %v4350_v34 = vld [vmem:[%s6086_s5 + $0x36c] ss:$16 sps:$4 sm:$0xff]  }
 0x2e1   : > { %v2747_v41 = vpop.f32.mrb[3].mxu1 }
 0x2e3   : > { %2957 = vmatmul.mubr.bf16.gmra.mrb[108].mxu1 %v4315_v35  ;;  %3182 = vmatmul.mubr.bf16.gmra.mrb[140].mxu0 %v4316_v3  ;;  %v5713_v35 = vpop.permute.xlu1 %1860 }
 0x2e4   : > { %2964 = vmatprep.mubr.bf16.mxu1 %v4317_v36  ;;  %3189 = vmatprep.mubr.bf16.mxu0 %v4319_v25  ;;  %v5715_v36 = vpop.permute.xlu0 %1785 }
 0x2e6   : > { %v5600_v44 = vpop.f32.mrb[4].mxu1 }
 0x2e7   : > { %v2752_v37 = vpop.f32.mrb[5].mxu1  ;;  %v5719_v41 = vpop.permute.xlu1 %1780 }
 0x2e8   : > { %v5608_v51 = vpop.f32.mrb[6].mxu1 }
 0x2e9   : > { %v2755_v42 = vpop.f32.mrb[7].mxu1 }
 0x2eb   : > { %2965 = vmatmul.mubr.bf16.gmra.mrb[112].mxu1 %v4321_v47  ;;  %3190 = vmatmul.mubr.bf16.gmra.mrb[144].mxu0 %v4322_v48  ;;  %v4352_v47 = vld [vmem:[%s6086_s5 + $0x368] ss:$16 sps:$4 sm:$0xff]   ;;  %v5729_v42 = vpop.permute.xlu1 %1870 }
 0x2ec   : > { %2972 = vmatprep.mubr.bf16.mxu1 %v4323_v39  ;;  %3197 = vmatprep.mubr.bf16.mxu0 %v4325_v56  ;;  %v4353_v39 = vld [vmem:[%s6086_s5 + $0x38c] ss:$16 sps:$4 sm:$0xff]  }
 0x2ee   : > { %v5620_v22 = vpop.f32.mrb[8].mxu1 }
 0x2ef   : > { %v2760_v59 = vpop.f32.mrb[9].mxu1 }
 0x2f0   : > { %v5628_v46 = vpop.f32.mrb[10].mxu1  ;;  %v5731_v59 = vpop.permute.xlu0 %1875 }
 0x2f1   : > { %v2763_v32 = vpop.f32.mrb[11].mxu1 }
 0x2f3   : > { %2973 = vmatmul.mubr.bf16.gmra.mrb[116].mxu1 %v4327_v60  ;;  %3198 = vmatmul.mubr.bf16.gmra.mrb[148].mxu0 %v4328_v43  ;;  %v2743_v60 = vadd.f32 %v5584_v11, %v5638_v55  ;;  %v4356_v11 = vld [vmem:[%s6086_s5 + $0x3ac] ss:$16 sps:$4 sm:$0xff]   ;;  %v5750_v55 = vld [vmem:[%s6088_s7] sm:$0xff] }
 0x2f4   : > { %2980 = vmatprep.mubr.bf16.mxu1 %v4329_v26  ;;  %3205 = vmatprep.mubr.bf16.mxu0 %v4331_v61  ;;  %v2746_v61 = vadd.f32 %v5592_v12, %v5636_v30 }
 0x2f6   : > { %v5640_v45 = vpop.f32.mrb[12].mxu1 }
 0x2f7   : > { %v2768_v49 = vpop.f32.mrb[13].mxu1 }
 0x2f8   : > { %v5650_v7 = vpop.f32.mrb[14].mxu1 }
 0x2f9   : > { %v2771_v8 = vpop.f32.mrb[15].mxu1 }
 0x2fb   : > { %2981 = vmatmul.mubr.bf16.gmra.mrb[120].mxu1 %v4333_v38  ;;  %3206 = vmatmul.mubr.bf16.gmra.mrb[152].mxu0 %v4334_v40  ;;  %v4355_v40 = vld [vmem:[%s6086_s5 + $0x388] ss:$16 sps:$4 sm:$0xff]  }
 0x2fc   : > { %2988 = vmatprep.mubr.bf16.mxu1 %v4335_v50  ;;  %3213 = vmatprep.mubr.bf16.mxu0 %v4337_v0 }
 0x2fe   : > { %v5662_v4 = vpop.f32.mrb[16].mxu1 }
 0x2ff   : > { %v2776_v62 = vpop.f32.mrb[17].mxu1 }
 0x300   : > { %v5672_v58 = vpop.f32.mrb[18].mxu1  ;;  %v3761_v62 = vcombine.high %v5750_v55, %v5750_v55 }
 0x301   : > { %v2779_v53 = vpop.f32.mrb[19].mxu1 }
 0x302   : > { %v2751_v53 = vadd.f32 %v5600_v44, %v5664_v14  ;;  %v4359_v44 = vld [vmem:[%s6086_s5 + $0x3cc] ss:$16 sps:$4 sm:$0xff]  }
 0x303   : > { %2989 = vmatmul.mubr.bf16.gmra.mrb[124].mxu1 %v4339_v57  ;;  %3214 = vmatmul.mubr.bf16.gmra.mrb[156].mxu0 %v4340_v15 }
 0x304   : > { %3221 = vmatprep.mubr.bf16.mxu0 %v4341_v52  ;;  %3229 = vmatprep.mubr.bf16.mxu1 %v4345_v6  ;;  %v5754_v52 = vpop.permute.xlu1 %1790  ;;  %v5756_v6 = vpop.permute.xlu0 %1795 }
 0x306   : > { %v5684_v31 = vpop.f32.mrb[20].mxu1 }
 0x307   : > { %v2784_v20 = vpop.f32.mrb[21].mxu1 }
 0x308   : > { %v5692_v18 = vpop.f32.mrb[22].mxu1 }
 0x309   : > { %v2787_v2 = vpop.f32.mrb[23].mxu1 }
 0x30b   : > { %3222 = vmatmul.mubr.bf16.gmra.mrb[160].mxu0 %v4346_v21  ;;  %3230 = vmatmul.mubr.bf16.vlgmr.msra.gmra.mrb[100].mxu1 %v4343_v54 }
 0x30c   : > { %3237 = vmatprep.mubr.bf16.mxu1 %v4347_v23  ;;  %3436 = vmatprep.mubr.bf16.mxu0 %v3761_v62  ;;  %v2754_v23 = vadd.f32 %v5608_v51, %v5660_v9  ;;  %v5774_v51 = vpop.permute.xlu1 %1880  ;;  %v5776_v9 = vpop.permute.xlu0 %1885 }
 0x30e   : > { %v5701_v19 = vpop.f32.mrb[24].mxu1 }
 0x30f   : > { %v2792_v10 = vpop.f32.mrb[25].mxu1 }
 0x310   : > { %v5708_v24 = vpop.f32.mrb[26].mxu1 }
 0x311   : > { %v2795_v3 = vpop.f32.mrb[27].mxu1 }
 0x313   : > { %3238 = vmatmul.mubr.bf16.gmra.mrb[104].mxu1 %v4349_v29 }
 0x314   : > { %3245 = vmatprep.mubr.bf16.mxu1 %v4350_v34  ;;  %v4358_v34 = vld [vmem:[%s6086_s5 + $0x3a8] ss:$16 sps:$4 sm:$0xff]  }
 0x316   : > { %v5717_v25 = vpop.f32.mrb[28].mxu1 }
 0x317   : > { %v2800_v37 = vpop.f32.mrb[29].mxu1 }
 0x318   : > { %v5724_v48 = vpop.f32.mrb[30].mxu1 }
 0x319   : > { %v2803_v56 = vpop.f32.mrb[31].mxu1 }
 0x31b   : > { %3246 = vmatmul.mubr.bf16.gmra.mrb[108].mxu1 %v4352_v47 }
 0x31c   : > { %3253 = vmatprep.mubr.bf16.mxu1 %v4353_v39 }
 0x31e   : > { %v5735_v43 = vpop.f32.mrb[32].mxu1  ;;  %v3031_v26 = vpop.f32.mrb[64].mxu0 }
 0x31f   : > { %v3032_v32 = vadd.f32 %v3031_v26, %v2743_v60  ;;  %v2808_v49 = vpop.f32.mrb[33].mxu1  ;;  %v3033_v38 = vpop.f32.mrb[65].mxu0  ;;  %v2759_v26 = vadd.f32 %v5620_v22, %v5699_v28  ;;  %v4362_v22 = vld [vmem:[%s6086_s5 + $0x3ec] ss:$16 sps:$4 sm:$0xff]  }
 0x320   : > { %v5742_v50 = vpop.f32.mrb[34].mxu1  ;;  %v3034_v0 = vpop.f32.mrb[66].mxu0  ;;  %v2762_v38 = vadd.f32 %v5628_v46, %v5697_v33 }
 0x321   : > { %v3035_v12 = vadd.f32 %v3034_v0, %v2746_v61  ;;  %v3036_v30 = vpop.f32.mrb[67].mxu0  ;;  %v2811_v8 = vpop.f32.mrb[35].mxu1  ;;  %v3286_v57 = vmax.f32 %v3032_v32, 0.0 }
 0x322   : > { %v1801_v46 = vpop.permute.xlu1 %1800  ;;  %v1806_v33 = vpop.permute.xlu0 %1805 }
 0x323   : > { %v3287_v15 = vmax.f32 %v3035_v12, 0.0  ;;  %3254 = vmatmul.mubr.bf16.gmra.mrb[112].mxu1 %v4355_v40  ;;  %v4361_v12 = vld [vmem:[%s6086_s5 + $0x3c8] ss:$16 sps:$4 sm:$0xff]  }
 0x324   : > { %3261 = vmatprep.mubr.bf16.mxu1 %v4356_v11 }
 0x325   : > { %v5760_v20 = vpack.c.bf16 %v3287_v15, %v3286_v57 }
 0x326   : > { %v5762_v54 = vpop.f32.mrb[36].mxu1  ;;  %v3039_v21 = vpop.f32.mrb[68].mxu0 }
 0x327   : > { %v3040_v2 = vadd.f32 %v3039_v21, %v2751_v53  ;;  %v2816_v10 = vpop.f32.mrb[37].mxu1  ;;  %v3041_v29 = vpop.f32.mrb[69].mxu0  ;;  %v2767_v21 = vadd.f32 %v5640_v45, %v5719_v41 }
 0x328   : > { %v5769_v3 = vpop.f32.mrb[38].mxu1  ;;  %v3042_v37 = vpop.f32.mrb[70].mxu0  ;;  %v2770_v29 = vadd.f32 %v5650_v7, %v5715_v36  ;;  %v2775_v7 = vadd.f32 %v5662_v4, %v5754_v52 }
 0x329   : > { %v3043_v14 = vadd.f32 %v3042_v37, %v2754_v23  ;;  %v3044_v47 = vpop.f32.mrb[71].mxu0  ;;  %v2819_v39 = vpop.f32.mrb[39].mxu1  ;;  %v3288_v56 = vmax.f32 %v3040_v2, 0.0 }
 0x32b   : > { %v3289_v60 = vmax.f32 %v3043_v14, 0.0  ;;  %3262 = vmatmul.mubr.bf16.gmra.mrb[116].mxu1 %v4358_v34  ;;  %v4364_v14 = vld [vmem:[%s6086_s5 + $0x3e8] ss:$16 sps:$4 sm:$0xff]  }
 0x32c   : > { %3269 = vmatprep.mubr.bf16.mxu1 %v4359_v44 }
 0x32d   : > { %v5780_v61 = vpack.c.bf16 %v3289_v60, %v3288_v56 }
 0x32e   : > { %v5782_v32 = vpop.f32.mrb[40].mxu1  ;;  %v3047_v49 = vpop.f32.mrb[72].mxu0 }
 0x32f   : > { %v3048_v40 = vadd.f32 %v3047_v49, %v2759_v26  ;;  %v2824_v0 = vpop.f32.mrb[41].mxu1  ;;  %v3049_v11 = vpop.f32.mrb[73].mxu0 }
 0x330   : > { %v5789_v30 = vpop.f32.mrb[42].mxu1  ;;  %v3050_v8 = vpop.f32.mrb[74].mxu0  ;;  %v2778_v11 = vadd.f32 %v5672_v58, %v5756_v6  ;;  %v2786_v6 = vadd.f32 %v5692_v18, %v1806_v33 }
 0x331   : > { %v3051_v28 = vadd.f32 %v3050_v8, %v2762_v38  ;;  %v3052_v62 = vpop.f32.mrb[75].mxu0  ;;  %v2827_v57 = vpop.f32.mrb[43].mxu1  ;;  %v3290_v15 = vmax.f32 %v3048_v40, 0.0 }
 0x332   : > { %v5807_v49 = vpop.permute.xlu1 %1890  ;;  %v5809_v38 = vpop.permute.xlu0 %1895 }
 0x333   : > { %v3291_v53 = vmax.f32 %v3051_v28, 0.0  ;;  %3270 = vmatmul.mubr.bf16.gmra.mrb[120].mxu1 %v4361_v12 }
 0x334   : > { %3277 = vmatprep.mubr.bf16.mxu1 %v4362_v22 }
 0x335   : > { %v5796_v23 = vpack.c.bf16 %v3291_v53, %v3290_v15 }
 0x336   : > { %v5798_v2 = vpop.f32.mrb[44].mxu1  ;;  %v3055_v10 = vpop.f32.mrb[76].mxu0 }
 0x337   : > { %v3056_v34 = vadd.f32 %v3055_v10, %v2767_v21  ;;  %v2832_v37 = vpop.f32.mrb[45].mxu1  ;;  %v3057_v44 = vpop.f32.mrb[77].mxu0 }
 0x338   : > { %v5805_v47 = vpop.f32.mrb[46].mxu1  ;;  %v3058_v39 = vpop.f32.mrb[78].mxu0 }
 0x339   : > { %v3059_v56 = vadd.f32 %v3058_v39, %v2770_v29  ;;  %v3060_v45 = vpop.f32.mrb[79].mxu0  ;;  %v2835_v41 = vpop.f32.mrb[47].mxu1  ;;  %v3292_v60 = vmax.f32 %v3056_v34, 0.0  ;;  %v2783_v29 = vadd.f32 %v5684_v31, %v1801_v46 }
 0x33a   : > { %v1811_v4 = vpop.permute.xlu1 %1810  ;;  %v1816_v52 = vpop.permute.xlu0 %1815 }
 0x33b   : > { %v3293_v26 = vmax.f32 %v3059_v56, 0.0  ;;  %3278 = vmatmul.mubr.bf16.gmra.mrb[124].mxu1 %v4364_v14  ;;  %v2791_v46 = vadd.f32 %v5701_v19, %v1811_v4 }
 0x33d   : > { %v5813_v36 = vpack.c.bf16 %v3293_v26, %v3292_v60 }
 0x33e   : > { %v5815_v40 = vpop.f32.mrb[48].mxu1  ;;  %v3063_v0 = vpop.f32.mrb[80].mxu0 }
 0x33f   : > { %v3064_v12 = vadd.f32 %v3063_v0, %v2775_v7  ;;  %v2840_v8 = vpop.f32.mrb[49].mxu1  ;;  %v3065_v22 = vpop.f32.mrb[81].mxu0 }
 0x340   : > { %v5819_v28 = vpop.f32.mrb[50].mxu1  ;;  %v3066_v62 = vpop.f32.mrb[82].mxu0  ;;  %v2794_v8 = vadd.f32 %v5708_v24, %v1816_v52 }
 0x341   : > { %v3067_v57 = vadd.f32 %v3066_v62, %v2778_v11  ;;  %v3068_v15 = vpop.f32.mrb[83].mxu0  ;;  %v2843_v53 = vpop.f32.mrb[51].mxu1  ;;  %v3294_v21 = vmax.f32 %v3064_v12, 0.0 }
 0x342   : > { %v5829_v11 = vpop.permute.xlu1 %1900  ;;  %v5831_v31 = vpop.permute.xlu0 %1905 }
 0x343   : > { %v3295_v10 = vmax.f32 %v3067_v57, 0.0 }
 0x345   : > { %v5822_v34 = vpack.c.bf16 %v3295_v10, %v3294_v21 }
 0x346   : > { %v5824_v37 = vpop.f32.mrb[52].mxu1  ;;  %v3071_v58 = vpop.f32.mrb[84].mxu0 }
 0x347   : > { %v3072_v44 = vadd.f32 %v3071_v58, %v2783_v29  ;;  %v2848_v14 = vpop.f32.mrb[53].mxu1  ;;  %v3073_v39 = vpop.f32.mrb[85].mxu0 }
 0x348   : > { %v5827_v56 = vpop.f32.mrb[54].mxu1  ;;  %v3074_v45 = vpop.f32.mrb[86].mxu0 }
 0x349   : > { %v3075_v41 = vadd.f32 %v3074_v45, %v2786_v6  ;;  %v3076_v60 = vpop.f32.mrb[87].mxu0  ;;  %v2851_v26 = vpop.f32.mrb[55].mxu1  ;;  %v3296_v7 = vmax.f32 %v3072_v44, 0.0 }
 0x34a   : > { %v1821_v44 = vpop.permute.xlu1 %1820  ;;  %v1826_v19 = vpop.permute.xlu0 %1825 }
 0x34b   : > { %v3297_v0 = vmax.f32 %v3075_v41, 0.0  ;;  %v2799_v4 = vadd.f32 %v5717_v25, %v1821_v44  ;;  %v2802_v52 = vadd.f32 %v5724_v48, %v1826_v19  ;;  %v2807_v25 = vadd.f32 %v5735_v43, %v5618_v27 }
 0x34c   : > { %v2810_v48 = vadd.f32 %v5742_v50, %v5616_v13  ;;  %v2815_v27 = vadd.f32 %v5762_v54, %v5658_v5  ;;  %v2818_v13 = vadd.f32 %v5769_v3, %v5648_v63  ;;  %v2826_v3 = vadd.f32 %v5789_v30, %v5680_v16 }
 0x34d   : > { %v5834_v12 = vpack.c.bf16 %v3297_v0, %v3296_v7  ;;  %v2831_v16 = vadd.f32 %v5798_v2, %v5713_v35 }
 0x34e   : > { %v5836_v18 = vpop.f32.mrb[56].mxu1  ;;  %v3079_v33 = vpop.f32.mrb[88].mxu0 }
 0x34f   : > { %v3080_v22 = vadd.f32 %v3079_v33, %v2791_v46  ;;  %v2856_v62 = vpop.f32.mrb[57].mxu1  ;;  %v3081_v57 = vpop.f32.mrb[89].mxu0 }
 0x350   : > { %v5839_v15 = vpop.f32.mrb[58].mxu1  ;;  %v3082_v53 = vpop.f32.mrb[90].mxu0 }
 0x351   : > { %v3083_v21 = vadd.f32 %v3082_v53, %v2794_v8  ;;  %v3084_v10 = vpop.f32.mrb[91].mxu0  ;;  %v2859_v29 = vpop.f32.mrb[59].mxu1  ;;  %v3298_v58 = vmax.f32 %v3080_v22, 0.0 }
 0x353   : > { %v3299_v6 = vmax.f32 %v3083_v21, 0.0 }
 0x355   : > { %v5842_v14 = vpack.c.bf16 %v3299_v6, %v3298_v58 }
 0x356   : > { %v5844_v39 = vpop.f32.mrb[60].mxu1  ;;  %v3087_v24 = vpop.f32.mrb[92].mxu0 }
 0x357   : > { %v3088_v45 = vadd.f32 %v3087_v24, %v2799_v4  ;;  %v2864_v41 = vpop.f32.mrb[61].mxu1  ;;  %v3089_v60 = vpop.f32.mrb[93].mxu0 }
 0x358   : > { %v5847_v26 = vpop.f32.mrb[62].mxu1  ;;  %v3090_v7 = vpop.f32.mrb[94].mxu0 }
 0x359   : > { %v3091_v0 = vadd.f32 %v3090_v7, %v2802_v52  ;;  %v3092_v46 = vpop.f32.mrb[95].mxu0  ;;  %v2867_v33 = vpop.f32.mrb[63].mxu1  ;;  %v3300_v8 = vmax.f32 %v3088_v45, 0.0 }
 0x35b   : > { %v3301_v22 = vmax.f32 %v3091_v0, 0.0 }
 0x35d   : > { %v5851_v62 = vpack.c.bf16 %v3301_v22, %v3300_v8 }
 0x35e   : > { %v5853_v57 = vpop.f32.mrb[64].mxu1  ;;  %v3095_v53 = vpop.f32.mrb[96].mxu0 }
 0x35f   : > { %v3096_v21 = vadd.f32 %v3095_v53, %v2807_v25  ;;  %v2872_v10 = vpop.f32.mrb[65].mxu1  ;;  %v3097_v29 = vpop.f32.mrb[97].mxu0  ;;  %v2823_v25 = vadd.f32 %v5782_v32, %v5682_v17 }
 0x360   : > { %v5857_v58 = vpop.f32.mrb[66].mxu1  ;;  %v3098_v6 = vpop.f32.mrb[98].mxu0 }
 0x361   : > { %v3099_v44 = vadd.f32 %v3098_v6, %v2810_v48  ;;  %v3100_v19 = vpop.f32.mrb[99].mxu0  ;;  %v2875_v4 = vpop.f32.mrb[67].mxu1  ;;  %v3302_v24 = vmax.f32 %v3096_v21, 0.0 }
 0x363   : > { %v3303_v52 = vmax.f32 %v3099_v44, 0.0 }
 0x365   : > { %v3358_v43 = vpack.c.bf16 %v3303_v52, %v3302_v24  ;;  %v5877_v24 = vpop.permute.xlu1 %1990  ;;  %v5879_v52 = vpop.permute.xlu0 %1995 }
 0x366   : > { %v5861_v45 = vpop.f32.mrb[68].mxu1  ;;  %v3103_v41 = vpop.f32.mrb[100].mxu0 }
 0x367   : > { %v3104_v50 = vadd.f32 %v3103_v41, %v2815_v27  ;;  %v2880_v60 = vpop.f32.mrb[69].mxu1  ;;  %v3105_v7 = vpop.f32.mrb[101].mxu0  ;;  %3801 = vmatprep.subr.bf16.mxu0 %v3358_v43  ;;  %v2834_v41 = vadd.f32 %v5805_v47, %v5706_v1  ;;  %v2839_v1 = vadd.f32 %v5815_v40, %v5729_v42 }
 0x368   : > { %v5865_v0 = vpop.f32.mrb[70].mxu1  ;;  %v3106_v46 = vpop.f32.mrb[102].mxu0  ;;  %3802 = vmatpush3.bf16.msra.mxu0 %v5760_v20 }
 0x369   : > { %v3107_v33 = vadd.f32 %v3106_v46, %v2818_v13  ;;  %v2883_v8 = vpop.f32.mrb[71].mxu1  ;;  %v3108_v22 = vpop.f32.mrb[103].mxu0  ;;  %v3304_v5 = vmax.f32 %v3104_v50, 0.0 }
 0x36a   : > { %v5890_v22 = vpop.permute.xlu1 %1910 }
 0x36b   : > { %v3305_v54 = vmax.f32 %v3107_v33, 0.0 }
 0x36d   : > { %v3359_v53 = vpack.c.bf16 %v3305_v54, %v3304_v5  ;;  %v5892_v5 = vpop.permute.xlu0 %1915 }
 0x36e   : > { %v5870_v48 = vpop.f32.mrb[72].mxu1  ;;  %v3111_v63 = vpop.f32.mrb[104].mxu0 }
 0x36f   : > { %v3112_v21 = vadd.f32 %v3111_v63, %v2823_v25  ;;  %v2888_v10 = vpop.f32.mrb[73].mxu1  ;;  %v3113_v29 = vpop.f32.mrb[105].mxu0  ;;  %3803 = vmatprep.subr.bf16.mxu0 %v3359_v53  ;;  %v2842_v53 = vadd.f32 %v5819_v28, %v5731_v59  ;;  %v2847_v59 = vadd.f32 %v5824_v37, %v5774_v51 }
 0x370   : > { %v5874_v20 = vpop.f32.mrb[74].mxu1  ;;  %v3114_v6 = vpop.f32.mrb[106].mxu0  ;;  %3804 = vmatpush3.bf16.msra.mxu0 %v5780_v61 }
 0x371   : > { %v3115_v44 = vadd.f32 %v3114_v6, %v2826_v3  ;;  %v2891_v19 = vpop.f32.mrb[75].mxu1  ;;  %v3116_v4 = vpop.f32.mrb[107].mxu0  ;;  %v3306_v17 = vmax.f32 %v3112_v21, 0.0 }
 0x372   : > { %v5903_v19 = vpop.permute.xlu1 %1920  ;;  %v5905_v4 = vpop.permute.xlu0 %1925 }
 0x373   : > { %v3307_v32 = vmax.f32 %v3115_v44, 0.0 }
 0x375   : > { %v3360_v30 = vpack.c.bf16 %v3307_v32, %v3306_v17 }
 0x376   : > { %v5883_v27 = vpop.f32.mrb[76].mxu1  ;;  %v3119_v43 = vpop.f32.mrb[108].mxu0 }
 0x377   : > { %v3120_v61 = vadd.f32 %v3119_v43, %v2831_v16  ;;  %v2896_v13 = vpop.f32.mrb[77].mxu1  ;;  %v3121_v50 = vpop.f32.mrb[109].mxu0  ;;  %3805 = vmatprep.subr.bf16.mxu0 %v3360_v30  ;;  %v2850_v16 = vadd.f32 %v5827_v56, %v5776_v9  ;;  %v2855_v9 = vadd.f32 %v5836_v18, %v5807_v49 }
 0x378   : > { %v5887_v60 = vpop.f32.mrb[78].mxu1  ;;  %v3122_v7 = vpop.f32.mrb[110].mxu0  ;;  %3806 = vmatpush3.bf16.msra.mxu0 %v5796_v23 }
 0x379   : > { %v3123_v46 = vadd.f32 %v3122_v7, %v2834_v41  ;;  %v2899_v33 = vpop.f32.mrb[79].mxu1  ;;  %v3124_v8 = vpop.f32.mrb[111].mxu0  ;;  %v3308_v35 = vmax.f32 %v3120_v61, 0.0 }
 0x37a   : > { %v5918_v33 = vpop.permute.xlu0 %2005 }
 0x37b   : > { %v3309_v2 = vmax.f32 %v3123_v46, 0.0  ;;  %v5916_v46 = vpop.permute.xlu1 %2000 }
 0x37d   : > { %v3361_v47 = vpack.c.bf16 %v3309_v2, %v3308_v35  ;;  %v2858_v2 = vadd.f32 %v5839_v15, %v5809_v38 }
 0x37e   : > { %v5896_v54 = vpop.f32.mrb[80].mxu1  ;;  %v3127_v25 = vpop.f32.mrb[112].mxu0 }
 0x37f   : > { %v3128_v23 = vadd.f32 %v3127_v25, %v2839_v1  ;;  %v2904_v63 = vpop.f32.mrb[81].mxu1  ;;  %v3129_v3 = vpop.f32.mrb[113].mxu0  ;;  %3807 = vmatprep.subr.bf16.mxu0 %v3361_v47 }
 0x380   : > { %v5900_v21 = vpop.f32.mrb[82].mxu1  ;;  %v3130_v10 = vpop.f32.mrb[114].mxu0  ;;  %3808 = vmatpush3.bf16.msra.mxu0 %v5813_v36 }
 0x381   : > { %v3131_v29 = vadd.f32 %v3130_v10, %v2842_v53  ;;  %v2907_v6 = vpop.f32.mrb[83].mxu1  ;;  %v3132_v44 = vpop.f32.mrb[115].mxu0  ;;  %v3310_v42 = vmax.f32 %v3128_v23, 0.0 }
 0x382   : > { %v1931_v10 = vpop.permute.xlu1 %1930  ;;  %v2863_v6 = vadd.f32 %v5844_v39, %v5829_v11 }
 0x383   : > { %v3311_v40 = vmax.f32 %v3131_v29, 0.0  ;;  %v1936_v29 = vpop.permute.xlu0 %1935 }
 0x385   : > { %v3362_v28 = vpack.c.bf16 %v3311_v40, %v3310_v42  ;;  %v2866_v42 = vadd.f32 %v5847_v26, %v5831_v31  ;;  %v2871_v31 = vadd.f32 %v5853_v57, %v5890_v22 }
 0x386   : > { %v5909_v17 = vpop.f32.mrb[84].mxu1  ;;  %v3135_v32 = vpop.f32.mrb[116].mxu0 }
 0x387   : > { %v3136_v36 = vadd.f32 %v3135_v32, %v2847_v59  ;;  %v2912_v30 = vpop.f32.mrb[85].mxu1  ;;  %v3137_v43 = vpop.f32.mrb[117].mxu0  ;;  %3809 = vmatprep.subr.bf16.mxu0 %v3362_v28 }
 0x388   : > { %v5913_v41 = vpop.f32.mrb[86].mxu1  ;;  %v3138_v61 = vpop.f32.mrb[118].mxu0  ;;  %3810 = vmatpush3.bf16.msra.mxu0 %v5822_v34 }
 0x389   : > { %v3139_v13 = vadd.f32 %v3138_v61, %v2850_v16  ;;  %v2915_v50 = vpop.f32.mrb[87].mxu1  ;;  %v3140_v7 = vpop.f32.mrb[119].mxu0  ;;  %v3312_v51 = vmax.f32 %v3136_v36, 0.0 }
 0x38a   : > { %v5938_v43 = vpop.permute.xlu1 %2010  ;;  %v5940_v61 = vpop.permute.xlu0 %2015  ;;  %v2874_v7 = vadd.f32 %v5857_v58, %v5892_v5 }
 0x38b   : > { %v3313_v37 = vmax.f32 %v3139_v13, 0.0  ;;  %v5947_v13 = vld [vmem:[%s6088_s7 + $0x8] sm:$0xff] }
 0x38d   : > { %v3363_v56 = vpack.c.bf16 %v3313_v37, %v3312_v51 }
 0x38e   : > { %v5922_v8 = vpop.f32.mrb[88].mxu1  ;;  %v3143_v35 = vpop.f32.mrb[120].mxu0 }
 0x38f   : > { %v3144_v34 = vadd.f32 %v3143_v35, %v2855_v9  ;;  %v2920_v1 = vpop.f32.mrb[89].mxu1  ;;  %v3145_v47 = vpop.f32.mrb[121].mxu0  ;;  %3811 = vmatprep.subr.bf16.mxu0 %v3363_v56  ;;  %v3760_v56 = vcombine.low %v5750_v55, %v5750_v55  ;;  %v3763_v35 = vcombine.high %v5947_v13, %v5947_v13 }
 0x390   : > { %v5926_v25 = vpop.f32.mrb[90].mxu1  ;;  %v3146_v53 = vpop.f32.mrb[122].mxu0  ;;  %3812 = vmatpush3.bf16.msra.mxu0 %v5834_v12 }
 0x391   : > { %v3147_v23 = vadd.f32 %v3146_v53, %v2858_v2  ;;  %v2923_v63 = vpop.f32.mrb[91].mxu1  ;;  %v3148_v3 = vpop.f32.mrb[123].mxu0  ;;  %v3314_v49 = vmax.f32 %v3144_v34, 0.0  ;;  %v2879_v53 = vadd.f32 %v5861_v45, %v5903_v19  ;;  %v2887_v45 = vadd.f32 %v5870_v48, %v1931_v10 }
 0x392   : > { %v1941_v5 = vpop.permute.xlu1 %1940 }
 0x393   : > { %v3315_v18 = vmax.f32 %v3147_v23, 0.0  ;;  %v1946_v23 = vpop.permute.xlu0 %1945 }
 0x394   : > { %v2898_v10 = vadd.f32 %v5887_v60, %v1946_v23 }
 0x395   : > { %v3364_v38 = vpack.c.bf16 %v3315_v18, %v3314_v49 }
 0x396   : > { %v5931_v15 = vpop.f32.mrb[92].mxu1  ;;  %v3151_v44 = vpop.f32.mrb[124].mxu0 }
 0x397   : > { %v3152_v40 = vadd.f32 %v3151_v44, %v2863_v6  ;;  %v2928_v59 = vpop.f32.mrb[93].mxu1  ;;  %v3153_v12 = vpop.f32.mrb[125].mxu0  ;;  %3813 = vmatprep.subr.bf16.mxu0 %v3364_v38 }
 0x398   : > { %v5935_v28 = vpop.f32.mrb[94].mxu1  ;;  %v3154_v32 = vpop.f32.mrb[126].mxu0  ;;  %3814 = vmatpush3.bf16.msra.mxu0 %v5842_v14 }
 0x399   : > { %v3155_v16 = vadd.f32 %v3154_v32, %v2866_v42  ;;  %v2931_v36 = vpop.f32.mrb[95].mxu1  ;;  %v3156_v30 = vpop.f32.mrb[127].mxu0  ;;  %v3316_v11 = vmax.f32 %v3152_v40, 0.0  ;;  %v2890_v32 = vadd.f32 %v5874_v20, %v1936_v29 }
 0x39a   : > { %v5966_v44 = vpop.permute.xlu1 %2020  ;;  %v5968_v59 = vpop.permute.xlu0 %2025 }
 0x39b   : > { %v3317_v39 = vmax.f32 %v3155_v16, 0.0 }
 0x39d   : > { %v3365_v26 = vpack.c.bf16 %v3317_v39, %v3316_v11 }
 0x39e   : > { %v5949_v50 = vpop.f32.mrb[96].mxu1  ;;  %v3159_v14 = vpop.f32.mrb[128].mxu0 }
 0x39f   : > { %v3160_v51 = vadd.f32 %v3159_v14, %v2871_v31  ;;  %v2936_v37 = vpop.f32.mrb[97].mxu1  ;;  %v3161_v9 = vpop.f32.mrb[129].mxu0  ;;  %3815 = vmatprep.subr.bf16.mxu0 %v3365_v26  ;;  %v2895_v14 = vadd.f32 %v5883_v27, %v1941_v5 }
 0x3a0   : > { %v5955_v57 = vpop.f32.mrb[98].mxu1  ;;  %v3162_v22 = vpop.f32.mrb[130].mxu0  ;;  %3816 = vmatpush3.bf16.msra.mxu0 %v5851_v62  ;;  %v2882_v62 = vadd.f32 %v5865_v0, %v5905_v4 }
 0x3a1   : > { %v3163_v2 = vadd.f32 %v3162_v22, %v2874_v7  ;;  %v3164_v34 = vpop.f32.mrb[131].mxu0  ;;  %v2939_v1 = vpop.f32.mrb[99].mxu1  ;;  %v3318_v47 = vmax.f32 %v3160_v51, 0.0 }
 0x3a2   : > { %v1951_v4 = vpop.permute.xlu1 %1950  ;;  %v1956_v39 = vpop.permute.xlu0 %1955 }
 0x3a3   : > { %v3319_v58 = vmax.f32 %v3163_v2, 0.0  ;;  %3437 = vmatmul.mubr.bf16.vlgmr.msra.gmra.mrb[164].mxu0 %v3760_v56  ;;  %v2903_v1 = vadd.f32 %v5896_v54, %v1951_v4  ;;  %v2906_v5 = vadd.f32 %v5900_v21, %v1956_v39 }
 0x3a4   : > { %3476 = vmatprep.mubr.bf16.mxu0 %v3763_v35 }
 0x3a5   : > { %v5962_v55 = vpack.c.bf16 %v3319_v58, %v3318_v47 }
 0x3a6   : > { %v3167_v63 = vpop.f32.mrb[132].mxu0  ;;  %v5977_v51 = vpop.permute.xlu1 %2030 }
 0x3a7   : > { %v3168_v3 = vadd.f32 %v3167_v63, %v2879_v53  ;;  %v3169_v49 = vpop.f32.mrb[133].mxu0  ;;  %v5980_v29 = vpop.permute.xlu0 %2035 }
 0x3a8   : > { %v3170_v18 = vpop.f32.mrb[134].mxu0 }
 0x3a9   : > { %v3171_v6 = vadd.f32 %v3170_v18, %v2882_v62  ;;  %v3172_v38 = vpop.f32.mrb[135].mxu0  ;;  %v3320_v42 = vmax.f32 %v3168_v3, 0.0 }
 0x3aa   : > { %v1961_v34 = vpop.permute.xlu1 %1960 }
 0x3ab   : > { %v3321_v40 = vmax.f32 %v3171_v6, 0.0  ;;  %v1966_v47 = vpop.permute.xlu0 %1965  ;;  %v2911_v38 = vadd.f32 %v5909_v17, %v1961_v34 }
 0x3ad   : > { %v5971_v19 = vpack.c.bf16 %v3321_v40, %v3320_v42  ;;  %v2914_v40 = vadd.f32 %v5913_v41, %v1966_v47 }
 0x3ae   : > { %v3175_v12 = vpop.f32.mrb[136].mxu0  ;;  %v5986_v3 = vpop.permute.xlu1 %2040 }
 0x3af   : > { %v3176_v16 = vadd.f32 %v3175_v12, %v2887_v45  ;;  %v3177_v0 = vpop.f32.mrb[137].mxu0  ;;  %v5988_v6 = vpop.permute.xlu0 %2045 }
 0x3b0   : > { %v3178_v36 = vpop.f32.mrb[138].mxu0 }
 0x3b1   : > { %v3179_v30 = vadd.f32 %v3178_v36, %v2890_v32  ;;  %v3180_v11 = vpop.f32.mrb[139].mxu0  ;;  %v3322_v31 = vmax.f32 %v3176_v16, 0.0 }
 0x3b2   : > { %v1971_v12 = vpop.permute.xlu1 %1970 }
 0x3b3   : > { %v3323_v26 = vmax.f32 %v3179_v30, 0.0  ;;  %v1976_v4 = vpop.permute.xlu0 %1975  ;;  %v2919_v11 = vadd.f32 %v5922_v8, %v1971_v12 }
 0x3b5   : > { %v5975_v7 = vpack.c.bf16 %v3323_v26, %v3322_v31  ;;  %v2922_v26 = vadd.f32 %v5926_v25, %v1976_v4 }
 0x3b6   : > { %v3183_v48 = vpop.f32.mrb[140].mxu0  ;;  %v5997_v31 = vpop.permute.xlu1 %2050 }
 0x3b7   : > { %v3184_v37 = vadd.f32 %v3183_v48, %v2895_v14  ;;  %v3185_v20 = vpop.f32.mrb[141].mxu0  ;;  %v6000_v48 = vpop.permute.xlu0 %2055 }
 0x3b8   : > { %v3186_v9 = vpop.f32.mrb[142].mxu0 }
 0x3b9   : > { %v3187_v56 = vadd.f32 %v3186_v9, %v2898_v10  ;;  %v3188_v22 = vpop.f32.mrb[143].mxu0  ;;  %v3324_v35 = vmax.f32 %v3184_v37, 0.0 }
 0x3ba   : > { %v1981_v22 = vpop.permute.xlu1 %1980 }
 0x3bb   : > { %v3325_v2 = vmax.f32 %v3187_v56, 0.0 }
 0x3bd   : > { %v5983_v27 = vpack.c.bf16 %v3325_v2, %v3324_v35  ;;  %v2927_v35 = vadd.f32 %v5931_v15, %v1981_v22  ;;  %v1986_v2 = vpop.permute.xlu0 %1985 }
 0x3be   : > { %v3191_v58 = vpop.f32.mrb[144].mxu0 }
 0x3bf   : > { %v3192_v53 = vadd.f32 %v3191_v58, %v2903_v1  ;;  %v3193_v60 = vpop.f32.mrb[145].mxu0  ;;  %v2930_v1 = vadd.f32 %v5935_v28, %v1986_v2 }
 0x3c0   : > { %v3194_v23 = vpop.f32.mrb[146].mxu0 }
 0x3c1   : > { %v3195_v63 = vadd.f32 %v3194_v23, %v2906_v5  ;;  %v3196_v62 = vpop.f32.mrb[147].mxu0  ;;  %v3326_v49 = vmax.f32 %v3192_v53, 0.0 }
 0x3c3   : > { %v3327_v18 = vmax.f32 %v3195_v63, 0.0  ;;  %v2935_v63 = vadd.f32 %v5949_v50, %v5877_v24 }
 0x3c5   : > { %v5991_v54 = vpack.c.bf16 %v3327_v18, %v3326_v49  ;;  %v2938_v18 = vadd.f32 %v5955_v57, %v5879_v52 }
 0x3c6   : > { %v3199_v42 = vpop.f32.mrb[148].mxu0 }
 0x3c7   : > { %v3200_v45 = vadd.f32 %v3199_v42, %v2911_v38  ;;  %v3201_v21 = vpop.f32.mrb[149].mxu0 }
 0x3c8   : > { %v3202_v32 = vpop.f32.mrb[150].mxu0 }
 0x3c9   : > { %v3203_v16 = vadd.f32 %v3202_v32, %v2914_v40  ;;  %v3204_v0 = vpop.f32.mrb[151].mxu0  ;;  %v3328_v36 = vmax.f32 %v3200_v45, 0.0 }
 0x3cb   : > { %v3329_v30 = vmax.f32 %v3203_v16, 0.0 }
 0x3cd   : > { %v5995_v39 = vpack.c.bf16 %v3329_v30, %v3328_v36 }
 0x3ce   : > { %v3207_v17 = vpop.f32.mrb[152].mxu0 }
 0x3cf   : > { %v3208_v14 = vadd.f32 %v3207_v17, %v2919_v11  ;;  %v3209_v41 = vpop.f32.mrb[153].mxu0 }
 0x3d0   : > { %v3210_v10 = vpop.f32.mrb[154].mxu0 }
 0x3d1   : > { %v3211_v37 = vadd.f32 %v3210_v10, %v2922_v26  ;;  %v3212_v20 = vpop.f32.mrb[155].mxu0  ;;  %v3330_v9 = vmax.f32 %v3208_v14, 0.0 }
 0x3d3   : > { %v3331_v56 = vmax.f32 %v3211_v37, 0.0 }
 0x3d5   : > { %v6003_v8 = vpack.c.bf16 %v3331_v56, %v3330_v9 }
 0x3d6   : > { %v3215_v34 = vpop.f32.mrb[156].mxu0 }
 0x3d7   : > { %v3216_v47 = vadd.f32 %v3215_v34, %v2927_v35  ;;  %v3217_v25 = vpop.f32.mrb[157].mxu0 }
 0x3d8   : > { %v3218_v58 = vpop.f32.mrb[158].mxu0 }
 0x3d9   : > { %v3219_v5 = vadd.f32 %v3218_v58, %v2930_v1  ;;  %v3220_v53 = vpop.f32.mrb[159].mxu0  ;;  %v3332_v60 = vmax.f32 %v3216_v47, 0.0 }
 0x3db   : > { %v3333_v23 = vmax.f32 %v3219_v5, 0.0 }
 0x3dd   : > { %v6008_v62 = vpack.c.bf16 %v3333_v23, %v3332_v60 }
 0x3de   : > { %v3223_v49 = vpop.f32.mrb[160].mxu0  ;;  %v3231_v15 = vpop.f32.mrb[100].mxu1 }
 0x3df   : > { %v3224_v38 = vadd.f32 %v3223_v49, %v2935_v63  ;;  %v4043_v28 = vadd.f32 %v3231_v15, %v5916_v46  ;;  %v3225_v42 = vpop.f32.mrb[161].mxu0  ;;  %v3233_v40 = vpop.f32.mrb[101].mxu1 }
 0x3e0   : > { %v3226_v45 = vpop.f32.mrb[162].mxu0  ;;  %v3234_v21 = vpop.f32.mrb[102].mxu1 }
 0x3e1   : > { %v3227_v12 = vadd.f32 %v3226_v45, %v2938_v18  ;;  %v4044_v32 = vadd.f32 %v3234_v21, %v5918_v33  ;;  %v3236_v16 = vpop.f32.mrb[103].mxu1  ;;  %v3228_v0 = vpop.f32.mrb[163].mxu0  ;;  %v3334_v24 = vmax.f32 %v3224_v38, 0.0  ;;  %v3336_v50 = vmax.f32 %v4043_v28, 0.0 }
 0x3e2   : > { %v2061_v45 = vpop.permute.xlu1 %2060 }
 0x3e3   : > { %v3335_v4 = vmax.f32 %v3227_v12, 0.0  ;;  %v3337_v36 = vmax.f32 %v4044_v32, 0.0  ;;  %v2066_v32 = vpop.permute.xlu0 %2065 }
 0x3e5   : > { %v3374_v30 = vpack.c.bf16 %v3335_v4, %v3334_v24  ;;  %v3375_v11 = vpack.c.bf16 %v3337_v36, %v3336_v50  ;;  %v3762_v50 = vcombine.low %v5947_v13, %v5947_v13 }
 0x3e6   : > { %v3239_v17 = vpop.f32.mrb[104].mxu1 }
 0x3e7   : > { %v4045_v52 = vadd.f32 %v3239_v17, %v5938_v43  ;;  %v3241_v57 = vpop.f32.mrb[105].mxu1  ;;  %3823 = vmatprep.subr.bf16.mxu0 %v3374_v30 }
 0x3e8   : > { %v3242_v46 = vpop.f32.mrb[106].mxu1  ;;  %3824 = vmatpush3.bf16.msra.mxu0 %v5962_v55 }
 0x3e9   : > { %v4046_v26 = vadd.f32 %v3242_v46, %v5940_v61  ;;  %v3244_v14 = vpop.f32.mrb[107].mxu1  ;;  %3825 = vmatprep.subr.bf16.mxu0 %v3375_v11  ;;  %v3338_v33 = vmax.f32 %v4045_v52, 0.0  ;;  %v3388_v52 = vpop.permute.xlu1 %3387 }
 0x3eb   : > { %v3339_v41 = vmax.f32 %v4046_v26, 0.0 }
 0x3ec   : > { %3826 = vmatpush3.bf16.msra.mxu0 %v5971_v19 }
 0x3ed   : > { %v3376_v10 = vpack.c.bf16 %v3339_v41, %v3338_v33 }
 0x3ee   : > { %v3247_v37 = vpop.f32.mrb[108].mxu1 }
 0x3ef   : > { %v4047_v20 = vadd.f32 %v3247_v37, %v5966_v44  ;;  %v3249_v9 = vpop.f32.mrb[109].mxu1  ;;  %3827 = vmatprep.subr.bf16.mxu0 %v3376_v10 }
 0x3f0   : > { %v3250_v43 = vpop.f32.mrb[110].mxu1  ;;  %3828 = vmatpush3.bf16.msra.mxu0 %v5975_v7 }
 0x3f1   : > { %v4048_v56 = vadd.f32 %v3250_v43, %v5968_v59  ;;  %v3252_v55 = vpop.f32.mrb[111].mxu1  ;;  %v3340_v22 = vmax.f32 %v4047_v20, 0.0 }
 0x3f3   : > { %v3341_v61 = vmax.f32 %v4048_v56, 0.0 }
 0x3f5   : > { %v3377_v35 = vpack.c.bf16 %v3341_v61, %v3340_v22 }
 0x3f6   : > { %v3255_v2 = vpop.f32.mrb[112].mxu1 }
 0x3f7   : > { %v4049_v34 = vadd.f32 %v3255_v2, %v5977_v51  ;;  %v3257_v1 = vpop.f32.mrb[113].mxu1  ;;  %3829 = vmatprep.subr.bf16.mxu0 %v3377_v35 }
 0x3f8   : > { %v3258_v19 = vpop.f32.mrb[114].mxu1  ;;  %3830 = vmatpush3.bf16.msra.mxu0 %v5983_v27 }
 0x3f9   : > { %v4050_v44 = vadd.f32 %v3258_v19, %v5980_v29  ;;  %v3260_v47 = vpop.f32.mrb[115].mxu1  ;;  %v3342_v25 = vmax.f32 %v4049_v34, 0.0 }
 0x3fb   : > { %v3343_v58 = vmax.f32 %v4050_v44, 0.0 }
 0x3fd   : > { %v3378_v7 = vpack.c.bf16 %v3343_v58, %v3342_v25 }
 0x3fe   : > { %v3263_v5 = vpop.f32.mrb[116].mxu1 }
 0x3ff   : > { %v4051_v59 = vadd.f32 %v3263_v5, %v5986_v3  ;;  %v3265_v53 = vpop.f32.mrb[117].mxu1  ;;  %3831 = vmatprep.subr.bf16.mxu0 %v3378_v7 }
 0x400   : > { %v3266_v60 = vpop.f32.mrb[118].mxu1  ;;  %3832 = vmatpush3.bf16.msra.mxu0 %v5991_v54 }
 0x401   : > { %v4052_v51 = vadd.f32 %v3266_v60, %v5988_v6  ;;  %v3268_v23 = vpop.f32.mrb[119].mxu1  ;;  %v3344_v63 = vmax.f32 %v4051_v59, 0.0 }
 0x403   : > { %v3345_v49 = vmax.f32 %v4052_v51, 0.0 }
 0x405   : > { %v3379_v27 = vpack.c.bf16 %v3345_v49, %v3344_v63 }
 0x406   : > { %v3271_v15 = vpop.f32.mrb[120].mxu1 }
 0x407   : > { %v4053_v29 = vadd.f32 %v3271_v15, %v5997_v31  ;;  %v3273_v18 = vpop.f32.mrb[121].mxu1  ;;  %3833 = vmatprep.subr.bf16.mxu0 %v3379_v27 }
 0x408   : > { %v3274_v38 = vpop.f32.mrb[122].mxu1  ;;  %3834 = vmatpush3.bf16.msra.mxu0 %v5995_v39 }
 0x409   : > { %v4054_v3 = vadd.f32 %v3274_v38, %v6000_v48  ;;  %v3276_v28 = vpop.f32.mrb[123].mxu1  ;;  %v3346_v42 = vmax.f32 %v4053_v29, 0.0 }
 0x40b   : > { %v3347_v40 = vmax.f32 %v4054_v3, 0.0 }
 0x40d   : > { %v3380_v54 = vpack.c.bf16 %v3347_v40, %v3346_v42 }
 0x40e   : > { %v3279_v6 = vpop.f32.mrb[124].mxu1 }
 0x40f   : > { %v4055_v21 = vadd.f32 %v3279_v6, %v2061_v45  ;;  %v3281_v12 = vpop.f32.mrb[125].mxu1  ;;  %3835 = vmatprep.subr.bf16.mxu0 %v3380_v54 }
 0x410   : > { %v3282_v16 = vpop.f32.mrb[126].mxu1  ;;  %3836 = vmatpush3.bf16.msra.mxu0 %v6003_v8 }
 0x411   : > { %v4056_v31 = vadd.f32 %v3282_v16, %v2066_v32  ;;  %v3284_v0 = vpop.f32.mrb[127].mxu1  ;;  %v3348_v24 = vmax.f32 %v4055_v21, 0.0 }
 0x413   : > { %v3349_v39 = vmax.f32 %v4056_v31, 0.0 }
 0x415   : > { %v3381_v48 = vpack.c.bf16 %v3349_v39, %v3348_v24 }
 0x417   : > { %3837 = vmatprep.subr.bf16.mxu0 %v3381_v48 }
 0x418   : > { %3838 = vmatpush3.bf16.msra.mxu0 %v6008_v62 }
 0x41b   : > { %3477 = vmatmul.mubr.bf16.vlgmr.msra.gmra.mrb[168].mxu0 %v3762_v50 }
 0x476   : > { %v3817_v4 = vpop.f32.mrb[164].mxu0 }
 0x477   : > { %v3818_v36 = vpop.f32.mrb[165].mxu0 }
 0x478   : > { %v3819_v30 = vadd.f32 %v3818_v36, %v3817_v4  ;;  %v3820_v11 = vpop.f32.mrb[166].mxu0 }
 0x479   : > { %v3821_v17 = vpop.f32.mrb[167].mxu0 }
 0x47a   : > { %v3439_v46 = vadd.f32 %v3819_v30, %v3388_v52 }
 0x4ee   : > { %v3839_v8 = vpop.f32.mrb[168].mxu0 }
 0x4ef   : > { %v3840_v57 = vpop.f32.mrb[169].mxu0 }
 0x4f0   : > { %v3841_v26 = vadd.f32 %v3840_v57, %v3839_v8  ;;  %v3842_v13 = vpop.f32.mrb[170].mxu0 }
 0x4f1   : > { %v3843_v14 = vpop.f32.mrb[171].mxu0 }
 0x4f2   : > { %v3479_v62 = vadd.f32 %v3841_v26, %v3439_v46 }
 0x4f4   : > { %3484 = vst [vmem:[%s323_s27] sm:$0xff] %v3479_v62 }
 0x4f5   : > { %4386 = shalt.err (!%p4383_p3)
}
 0x4f6   : > { %s4387_s21 = scalar_lea.hbm %s6039_s16, 128  ;;  %s4391_s27 = scalar_lea.hbm %s6090_s9, 256 }
 0x4f7   : > { %p4388_p4 = scmp.ne.s32.totalorder %s6039_s16, %s4387_s21  ;;  %p4392_p9 = scmp.lt.u32.totalorder %s6039_s16, %s6090_s9 }
 0x4f8   : > { %p4393_p10 = scmp.lt.u32.totalorder %s4391_s27, %s4387_s21  ;;  %p4395_p12 = scmp.lt.u32.totalorder %s4387_s21, %s6039_s16 }
 0x4f9   : > { %p4389_p7 = pnand %p4388_p4, %p4534_p5 }
 0x4fa   : > { %p4394_p11 = por %p4393_p10, %p4392_p9 }
 0x4fb   : > { %p4390_p8 = pneg %p4389_p7 }
 0x4fc   : > { %p4396_p13 = por %p4395_p12, %p4394_p11 }
 0x4fe   : > { %p4397_p0 = pnand %p4396_p13, %p4390_p8 }
 0x500   : > { %4400 = shalt.err (!%p4397_p0)
}
 0x501   : > { %4090 = dma.vmem_to_hbm [thread:$0]  (%p4534_p5), %s6041_s28, 128, %s6039_s16, %s3486_s17  }
 0x502 PF: > { %p4096_p1 = scmp.ge.s32.totalorder %s4435_s12, 2  ;;  %s3511_s13 = sand.u32 1, %s4423_s30  }
 0x503   : > { %s3512_s22 = scalar_lea.sflag [#allocation3], %s3511_s13 }
 0x504   : > { %p4093_p2 = pnand %p4096_p1, %p4538_p6 }
 0x506   : > { %4418 = dma.done.wait (!%p4093_p2), %s3512_s22, 128  }
 0x507   : > { %4420 = vsyncadd (!%p4093_p2), %s3512_s22, 4294967168  ;;  %p19_p3 = scmp.ge.s32.totalorder %s4521_s15, 4   ;;  %s6095_s30 = smov %s4427_s10 }
 0x508   : > { %s6096_s10 = smov %s4431_s11  ;;  %s6097_s11 = smov %s4532_s18 }
 0x509   : > { %s6098_s12 = smov %s4521_s15  ;;  %21 = sbr.rel (!%p19_p3) target bundleno = 3 (0x3), region = 91 }
 0x510   :  { %3517 = vsyncpa [#allocation3], 1 }
 0x511   :  { %3519 = vsyncpa [#allocation3 + $0x1], 1 }

</bundles_post_ra>
